<compile_context>
chip_gen: v7x
topology: tpu7x:2x2x1
jax: 0.10.0
libtpu: 0.0.40
codegen_flags: <defaults>
</compile_context>

<pallas_src>
import functools

import jax
import jax.numpy as jnp
from jax.experimental import pallas as pl
from jax.experimental.pallas import tpu as pltpu


def _round_up(x: int, m: int) -> int:
    return ((x + m - 1) // m) * m


def _x2_powers_kernel(x2_ref, sq_ref, cu_ref, *, precision):
    """One-shot prologue: x2^2 and x2^3 (K x K fits comfortably in VMEM here)."""
    x2 = x2_ref[...]
    sq = jnp.dot(x2, x2, preferred_element_type=jnp.float32, precision=precision)
    cu = jnp.dot(sq, x2, preferred_element_type=jnp.float32, precision=precision)
    sq_ref[...] = sq.astype(sq_ref.dtype)
    cu_ref[...] = cu.astype(cu_ref.dtype)


def _cat_mm_kernel(x1_ref, x2sq_ref, x2cu_ref, o_ref, *, precision):
    """Per M-tile: two independent MXU matmuls, results stored straight into
    the four output lane-slices (no jnp.concatenate, no extra vreg copy)."""
    k = x2sq_ref.shape[1]
    x1 = x1_ref[...]
    p2 = jnp.dot(x1, x2sq_ref[...], preferred_element_type=jnp.float32,
                 precision=precision)                       # x1 @ x2^2
    p3 = jnp.dot(x1, x2cu_ref[...], preferred_element_type=jnp.float32,
                 precision=precision)                       # x1 @ x2^3
    p2c = p2.astype(o_ref.dtype)
    o_ref[:, 0 * k:1 * k] = p2c                             # v1
    o_ref[:, 1 * k:2 * k] = p3.astype(o_ref.dtype)          # v2
    o_ref[:, 2 * k:3 * k] = p2c                             # v3
    o_ref[:, 3 * k:4 * k] = p2c                             # v4


def cat_mm(x1, x2, *, tm: int = 128, precision=jax.lax.Precision.HIGHEST):
    M, K = x1.shape
    assert x2.shape == (K, K), "x2 must be square for the chained mm to be valid"
    dtype = x1.dtype
    itemsize = jnp.dtype(dtype).itemsize

    # ---- Prologue: x2^2 and x2^3, computed once (breaks the p1->p2->p3 chain).
    # TODO(synk): tile this prologue over K if K ever grows beyond a few
    # thousand; for this module's shapes the whole (K, K) fits in VMEM.
    x2sq, x2cu = pl.pallas_call(
        functools.partial(_x2_powers_kernel, precision=precision),
        out_shape=(jax.ShapeDtypeStruct((K, K), dtype),
                   jax.ShapeDtypeStruct((K, K), dtype)),
    )(x2)

    # ---- Main kernel: grid over M, x2 powers VMEM-resident, lane-dense output.
    tm = min(tm, _round_up(M, 8))           # tm is a multiple of 8
    m_pad = _round_up(M, tm)
    x1p = x1 if m_pad == M else jnp.pad(x1, ((0, m_pad - M), (0, 0)))
    grid = (m_pad // tm,)

    # VMEM budget (double-buffered x1/out tiles + resident x2 powers), with
    # 2x headroom, clamped so it is safe on v7x's 64 MiB physical VMEM.
    vmem_need = itemsize * (2 * tm * K + 2 * K * K + 2 * tm * 4 * K)
    vmem_limit = int(min(max(2 * vmem_need, 4 << 20), 48 << 20))

    vmem = pltpu.MemorySpace.VMEM
    out = pl.pallas_call(
        functools.partial(_cat_mm_kernel, precision=precision),
        out_shape=jax.ShapeDtypeStruct((m_pad, 4 * K), dtype),
        grid=grid,
        in_specs=[
            pl.BlockSpec((tm, K), lambda i: (i, 0), memory_space=vmem),
            pl.BlockSpec((K, K), lambda i: (0, 0), memory_space=vmem),   # resident
            pl.BlockSpec((K, K), lambda i: (0, 0), memory_space=vmem),   # resident
        ],
        out_specs=pl.BlockSpec((tm, 4 * K), lambda i: (i, 0), memory_space=vmem),
        compiler_params=pltpu.CompilerParams(
            dimension_semantics=("parallel",),     # megacore sharding on v7x
            vmem_limit_bytes=vmem_limit,
        ),
        cost_estimate=pl.CostEstimate(
            flops=4 * m_pad * K * K,               # two (m_pad,K)x(K,K) matmuls
            transcendentals=0,
            bytes_accessed=itemsize * (m_pad * K + 2 * K * K + m_pad * 4 * K),
        ),
    )(x1p, x2sq, x2cu)

    return out[:M] if m_pad != M else out


def _reference(x1, x2):
    hp = jax.lax.Precision.HIGHEST
    p1 = jnp.dot(x1, x2, precision=hp)
    p2 = jnp.dot(p1, x2, precision=hp)     # v1 = v3 = v4
    p3 = jnp.dot(p2, x2, precision=hp)     # v2
    return jnp.concatenate([p2, p3, p2, p2], axis=1)


if __name__ == "__main__":
    key = jax.random.PRNGKey(0)
    k1, k2 = jax.random.split(key)
    # Lane-dense shapes (K = 128 fills the 128-lane vregs; M = 256 -> 2 tiles).
    M, K = 256, 128
    x1 = jax.random.normal(k1, (M, K), dtype=jnp.float32)
    x2 = jax.random.normal(k2, (K, K), dtype=jnp.float32) / jnp.sqrt(jnp.float32(K))

    out = jax.jit(cat_mm)(x1, x2)
    jax.block_until_ready(out)

    ref = _reference(x1, x2)
    assert out.shape == (M, 4 * K)
    assert jnp.allclose(out, ref, atol=3e-3, rtol=3e-3), float(
        jnp.max(jnp.abs(out - ref)))
    print("KERNEL_OK")
</pallas_src>

<mosaic_0001>
module attributes {stable_mosaic.version = 11 : i64} {
  func.func @_cat_mm_kernel(%arg0: i32, %arg1: memref<128x128xf32, #tpu.memory_space<vmem>>, %arg2: memref<128x128xf32, #tpu.memory_space<vmem>>, %arg3: memref<128x128xf32, #tpu.memory_space<vmem>>, %arg4: memref<128x512xf32, #tpu.memory_space<vmem>>) attributes {dimension_semantics = [#tpu.dimension_semantics<parallel>], iteration_bounds = array<i64: 2>, scalar_prefetch = 0 : i64, scratch_operands = 0 : i64, tpu.core_type = #tpu.core_type<tc>, window_params = [{transform_indices = @transform_0, window_bounds = array<i64: 128, 128>}, {pipeline_mode = #tpu.pipeline_mode<synchronous>, transform_indices = @transform_1, window_bounds = array<i64: 128, 128>}, {pipeline_mode = #tpu.pipeline_mode<synchronous>, transform_indices = @transform_2, window_bounds = array<i64: 128, 128>}, {transform_indices = @transform_3, window_bounds = array<i64: 128, 512>}]} {
    %c0 = arith.constant 0 : index
    %c0_0 = arith.constant 0 : index
    %0 = vector.load %arg1[%c0, %c0_0] : memref<128x128xf32, #tpu.memory_space<vmem>>, vector<128x128xf32>
    %c0_1 = arith.constant 0 : index
    %c0_2 = arith.constant 0 : index
    %1 = vector.load %arg2[%c0_1, %c0_2] : memref<128x128xf32, #tpu.memory_space<vmem>>, vector<128x128xf32>
    %cst = arith.constant dense<0.000000e+00> : vector<128x128xf32>
    %2 = tpu.matmul %0, %1, %cst {dimension_numbers = #tpu.dot_dimension_numbers<[1], [0], [0], [1], [0, 0, 1, 1], [], []>, precision = #tpu.contract_precision<fp32>} : vector<128x128xf32>, vector<128x128xf32>, vector<128x128xf32> -> vector<128x128xf32>
    %c0_3 = arith.constant 0 : index
    %c0_4 = arith.constant 0 : index
    %3 = vector.load %arg3[%c0_3, %c0_4] : memref<128x128xf32, #tpu.memory_space<vmem>>, vector<128x128xf32>
    %cst_5 = arith.constant dense<0.000000e+00> : vector<128x128xf32>
    %4 = tpu.matmul %0, %3, %cst_5 {dimension_numbers = #tpu.dot_dimension_numbers<[1], [0], [0], [1], [0, 0, 1, 1], [], []>, precision = #tpu.contract_precision<fp32>} : vector<128x128xf32>, vector<128x128xf32>, vector<128x128xf32> -> vector<128x128xf32>
    %c0_6 = arith.constant 0 : index
    %c0_7 = arith.constant 0 : index
    %5 = vector.load %arg4[%c0_6, %c0_7] : memref<128x512xf32, #tpu.memory_space<vmem>>, vector<128x128xf32>
    tpu.vector_store %arg4[%c0_6, %c0_7], %2 {strides = array<i32>} : memref<128x512xf32, #tpu.memory_space<vmem>>, vector<128x128xf32>,
    %c0_8 = arith.constant 0 : index
    %c128 = arith.constant 128 : index
    %6 = vector.load %arg4[%c0_8, %c128] : memref<128x512xf32, #tpu.memory_space<vmem>>, vector<128x128xf32>
    tpu.vector_store %arg4[%c0_8, %c128], %4 {strides = array<i32>} : memref<128x512xf32, #tpu.memory_space<vmem>>, vector<128x128xf32>,
    %c0_9 = arith.constant 0 : index
    %c256 = arith.constant 256 : index
    %7 = vector.load %arg4[%c0_9, %c256] : memref<128x512xf32, #tpu.memory_space<vmem>>, vector<128x128xf32>
    tpu.vector_store %arg4[%c0_9, %c256], %2 {strides = array<i32>} : memref<128x512xf32, #tpu.memory_space<vmem>>, vector<128x128xf32>,
    %c0_10 = arith.constant 0 : index
    %c384 = arith.constant 384 : index
    %8 = vector.load %arg4[%c0_10, %c384] : memref<128x512xf32, #tpu.memory_space<vmem>>, vector<128x128xf32>
    tpu.vector_store %arg4[%c0_10, %c384], %2 {strides = array<i32>} : memref<128x512xf32, #tpu.memory_space<vmem>>, vector<128x128xf32>,
    return
  }
  func.func @transform_0(%arg0: i32) -> (i32, i32) {
    %c0_i32 = arith.constant 0 : i32
    %c0_i32_0 = arith.constant 0 : i32
    return %arg0, %c0_i32 : i32, i32
  }
  func.func @transform_1(%arg0: i32) -> (i32, i32) {
    %c0_i32 = arith.constant 0 : i32
    %c0_i32_0 = arith.constant 0 : i32
    %c0_i32_1 = arith.constant 0 : i32
    return %c0_i32, %c0_i32_0 : i32, i32
  }
  func.func @transform_2(%arg0: i32) -> (i32, i32) {
    %c0_i32 = arith.constant 0 : i32
    %c0_i32_0 = arith.constant 0 : i32
    %c0_i32_1 = arith.constant 0 : i32
    return %c0_i32, %c0_i32_0 : i32, i32
  }
  func.func @transform_3(%arg0: i32) -> (i32, i32) {
    %c0_i32 = arith.constant 0 : i32
    %c0_i32_0 = arith.constant 0 : i32
    return %arg0, %c0_i32 : i32, i32
  }
}

module attributes {stable_mosaic.version = 11 : i64} {
  func.func @_x2_powers_kernel(%arg0: memref<128x128xf32, #tpu.memory_space<vmem>>, %arg1: memref<128x128xf32, #tpu.memory_space<vmem>>, %arg2: memref<128x128xf32, #tpu.memory_space<vmem>>) attributes {dimension_semantics = [], scalar_prefetch = 0 : i64, scratch_operands = 0 : i64, tpu.core_type = #tpu.core_type<tc>} {
    %c0 = arith.constant 0 : index
    %c0_0 = arith.constant 0 : index
    %0 = vector.load %arg0[%c0, %c0_0] : memref<128x128xf32, #tpu.memory_space<vmem>>, vector<128x128xf32>
    %cst = arith.constant dense<0.000000e+00> : vector<128x128xf32>
    %1 = tpu.matmul %0, %0, %cst {dimension_numbers = #tpu.dot_dimension_numbers<[1], [0], [0], [1], [0, 0, 1, 1], [], []>, precision = #tpu.contract_precision<fp32>} : vector<128x128xf32>, vector<128x128xf32>, vector<128x128xf32> -> vector<128x128xf32>
    %cst_1 = arith.constant dense<0.000000e+00> : vector<128x128xf32>
    %2 = tpu.matmul %1, %0, %cst_1 {dimension_numbers = #tpu.dot_dimension_numbers<[1], [0], [0], [1], [0, 0, 1, 1], [], []>, precision = #tpu.contract_precision<fp32>} : vector<128x128xf32>, vector<128x128xf32>, vector<128x128xf32> -> vector<128x128xf32>
    %c0_2 = arith.constant 0 : index
    %c0_3 = arith.constant 0 : index
    %3 = vector.load %arg1[%c0_2, %c0_3] : memref<128x128xf32, #tpu.memory_space<vmem>>, vector<128x128xf32>
    tpu.vector_store %arg1[%c0_2, %c0_3], %1 {strides = array<i32>} : memref<128x128xf32, #tpu.memory_space<vmem>>, vector<128x128xf32>,
    %c0_4 = arith.constant 0 : index
    %c0_5 = arith.constant 0 : index
    %4 = vector.load %arg2[%c0_4, %c0_5] : memref<128x128xf32, #tpu.memory_space<vmem>>, vector<128x128xf32>
    tpu.vector_store %arg2[%c0_4, %c0_5], %2 {strides = array<i32>} : memref<128x128xf32, #tpu.memory_space<vmem>>, vector<128x128xf32>,
    return
  }
}

</mosaic_0001>

<bundles_post_ra>
// kernel: cat_mm.3
= control target key start
LH: loop header
LB: loop body
LE: loop exit
PB: predicated region body
PF: predicated region fallthrough
CT: control target
= control target key end

     0   :  { %8 = vsyncpa [#allocation3], 0  ;;  %s6175_s0 = inlined_call_operand.hbm [shape: f32[256,128], index: 0, kind: input, shape index: {}]   ;;  %s6176_s1 = inlined_call_operand.vmem [shape: f32[128,128], index: 1, kind: input, shape index: {}]   ;;  %s6177_s2 = inlined_call_operand.vmem [shape: f32[128,128], index: 2, kind: input, shape index: {}]   ;;  %s6178_s3 = inlined_call_operand.hbm [shape: f32[256,512], index: 3, kind: output, shape index: {}]  }
   0x1   :  { %10 = vsyncpa [#allocation3 + $0x1], 0 }
   0x2   :  { %11 = vsyncpa [#allocation4], 0 }
   0x3   :  { %13 = vsyncpa [#allocation4 + $0x1], 0  ;;  %s4755_s12 = smov 0   ;;  %s4757_s13 = smov 0  }
   0x4   :  { %s4759_s14 = smov 0   ;;  %s4761_s15 = smov 0  }
   0x5 LB: > { %s4776_s16 = sadd.s32 4294967295, %s4727_s15   ;;  %s2963_s17 = sadd.s32 4294967294, %s4727_s15   ;;  %s4727_s15 = sphi %s4761_s15, %s6511_s15   ;;  %s4723_s14 = sphi %s4759_s14, %s6510_s14   ;;  %s4719_s13 = sphi %s4757_s13, %s6509_s13   ;;  %s4715_s12 = sphi %s4755_s12, %s6508_s12  }
   0x6   : > { %s4780_s18 = sadd.s32 1, %s4727_s15   ;;  %s26_s19 = sadd.s32 1, %s4723_s14 }
   0x7   : > { %s23_s20 = ssub.s32 %s4727_s15, %s4780_s18  ;;  %p33_p0 = scmp.ne.s32.totalorder %s4723_s14, %s4719_s13 }
   0x8   : > { %p24_p1 = scmp.eq.s32.totalorder %s23_s20, 0  ;;  %p34_p2 = scmp.eq.s32.totalorder %s4727_s15, 0 }
   0x9   : > { %p39_p3 = scmp.ne.s32.totalorder %s4719_s13, %s4715_s12  ;;  %p40_p4 = scmp.eq.s32.totalorder %s4776_s16, 0 }
   0xa   : > { %s4792_s21 = scalar_select %p24_p1, %s4723_s14, %s26_s19  }
   0xb   : > { %p4794_p5 = por %p34_p2, %p33_p0  ;;  %p4798_p6 = por %p40_p4, %p39_p3 }
   0xc   : > { %p105_p7 = scmp.eq.s32.totalorder %s4776_s16, 1  ;;  %p111_p8 = scmp.eq.s32.totalorder %s2963_s17, 1 }
   0xd   : > { %p4593_p10 = scmp.lt.s32.totalorder %s4727_s15, 2  ;;  %s137_s26 = sand.u32 1, %s4723_s14  }
   0xe   : > { %p4805_p11 = por %p105_p7, %p33_p0  ;;  %p4809_p12 = por %p111_p8, %p39_p3 }
   0xf   : > { %s2978_s27 = sshll.u32 %s4727_s15, 11  ;;  %s2966_s28 = sshll.u32 %s137_s26, 7 }
  0x10   : > { %s6333_s24 = scalar_select %p4805_p11, 1, 0 }
  0x11   : > { %s6334_s25 = scalar_select %p4809_p12, 1, 0 }
  0x12   : > { %s4818_s4 = scalar_lea.hbm %s6175_s0, %s2978_s27  ;;  %s141_s5 = scalar_lea.vmem [#allocation2], %s2966_s28 }
  0x13   : > { %s148_s6 = sshll.u32 %s141_s5, 4  ;;  %p4822_p13 = pnand %p4593_p10, %p4794_p5  ;;  %s4826_s6 = int_to_ptr.vmem [resolvable:$true] %s148_s6 }
  0x14   : > { %s4828_s8 = scalar_lea.sflag [#allocation3], %s137_s26  ;;  %s4631_s9 = scalar_lea.hbm %s4818_s4, 2048 }
  0x15   : > { %p4632_p0 = scmp.ne.s32.totalorder %s4818_s4, %s4631_s9  ;;  %p4633_p1 = pneg %p4822_p13 }
  0x16   : > { %s4636_s17 = scalar_lea.hbm %s6175_s0, 4096  ;;  %p4637_p4 = scmp.lt.u32.totalorder %s4818_s4, %s6175_s0 }
  0x17   : > { %p4634_p2 = pnand %p4633_p1, %p4632_p0  ;;  %p4638_p5 = scmp.lt.u32.totalorder %s4636_s17, %s4631_s9 }
  0x18   : > { %p4640_p8 = scmp.lt.u32.totalorder %s4631_s9, %s4818_s4 }
  0x19   : > { %p4635_p3 = pneg %p4634_p2  ;;  %p4639_p7 = por %p4638_p5, %p4637_p4 }
  0x1b   : > { %p4641_p10 = por %p4640_p8, %p4639_p7 }
  0x1d   : > { %p4642_p9 = pnand %p4641_p10, %p4635_p3 }
  0x1f   : > { %4645 = shalt.err (!%p4642_p9)
}
  0x20   : > { %s4646_s22 = scalar_lea.vmem %s4826_s6, 2048  ;;  %s4729_s26 = smov [#allocation2]  }
  0x21   : > { %p4647_p0 = scmp.ne.s32.totalorder %s4826_s6, %s4646_s22  ;;  %s4651_s27 = sshll.u32 %s4729_s26, 4  ;;  %s4652_s27 = int_to_ptr.vmem [resolvable:$false] %s4651_s27 }
  0x22   : > { %s4653_s28 = scalar_lea.vmem %s4652_s27, 4096  ;;  %p4654_p11 = scmp.lt.s32.totalorder %s4826_s6, %s4652_s27 }
  0x23   : > { %p4649_p2 = pnand %p4647_p0, %p4633_p1  ;;  %p4655_p4 = scmp.lt.s32.totalorder %s4653_s28, %s4646_s22 }
  0x25   : > { %p4650_p12 = pneg %p4649_p2  ;;  %p4656_p5 = por %p4655_p4, %p4654_p11 }
  0x27   : > { %p4657_p7 = pnand %p4656_p5, %p4650_p12 }
  0x29   : > { %4660 = shalt.err (!%p4657_p7)
}
  0x2a   : > { %s4730_s29 = smov 128   ;;  %s4731_s30 = smov 8  }
  0x2b   : > { %4588 = dma.hbm_to_vmem [thread:$0]  (!%p4822_p13), %s4818_s4, 2048, %s4826_s6, %s4828_s8, %s4730_s29, %s4730_s29, %s4731_s30  }
  0x2c   : > { %p2969_p9 = scmp.ge.s32.totalorder %s4727_s15, 1  ;;  %p156_p1 = scmp.lt.s32.totalorder %s4727_s15, 3 }
  0x2e   : > { %p157_p3 = pnand %p2969_p9, %p156_p1 }
  0x30   : > { %160 = sbr.rel (%p157_p3) target bundleno = 532 (0x214), region = 32 }
  0x37   : > { %s4859_s5 = sand.u32 1, %s4719_s13  }
  0x38   : > { %s2970_s9 = sshll.u32 %s4859_s5, 7  ;;  %s163_s10 = scalar_lea.sflag [#allocation3], %s4859_s5 }
  0x39   : > { %s4863_s11 = scalar_lea.vmem [#allocation2], %s2970_s9 }
  0x3a   : > { %4706 = dma.done.wait (%p4798_p6), %s163_s10, 2048  }
  0x3b   : > { %4708 = vsyncadd (%p4798_p6), %s163_s10, 4294965248  ;;  %v4872_v0 = vld [vmem:[%s6176_s1] sm:$0xff]  ;;  %v4877_v1 = vld [vmem:[%s6176_s1 + $0x8] sm:$0xff]  ;;  %s2980_s6 = sshll.u32 %s4776_s16, 13  ;;  %s2876_s16 = scalar_lea.sflag [#allocation4], %s4859_s5 }
  0x3c   : > { %v4882_v2 = vld [vmem:[%s6177_s2] sm:$0xff]  ;;  %v224_v3 = vand.u32 4294901760, %v4872_v0  ;;  %v227_v4 = vand.u32 4294901760, %v4877_v1  ;;  %v4889_v5 = vld [vmem:[%s6177_s2 + $0x8] sm:$0xff]  ;;  %v4895_v7 = vld [vmem:[%s6176_s1 + $0x10] sm:$0xff]  ;;  %s6124_s19 = scalar_lea.hbm %s6178_s3, %s2980_s6  ;;  %p6505_p11 = scmp.ne.s32.totalorder %s6333_s24, 0 }
  0x3d   : > { %v1526_v6 = vand.u32 4294901760, %v4882_v2  ;;  %v4900_v8 = vld [vmem:[%s6176_s1 + $0x18] sm:$0xff]  ;;  %v1529_v9 = vand.u32 4294901760, %v4889_v5  ;;  %v6201_v10 = vand.u32 4294901760, %v4895_v7  ;;  %v4908_v12 = vld [vmem:[%s6177_s2 + $0x10] sm:$0xff]  ;;  %v4918_v14 = vld [vmem:[%s6176_s1 + $0x20] sm:$0xff] }
  0x3e   : > { %v6198_v11 = vand.u32 4294901760, %v4900_v8  ;;  %v4913_v13 = vld [vmem:[%s6177_s2 + $0x18] sm:$0xff]  ;;  %v4924_v15 = vpack.c.bf16 %v227_v4, %v224_v3  ;;  %v6197_v16 = vand.u32 4294901760, %v4908_v12  ;;  %v4931_v18 = vld [vmem:[%s6176_s1 + $0x28] sm:$0xff]  ;;  %v6193_v19 = vand.u32 4294901760, %v4918_v14  ;;  %v4937_v20 = vld [vmem:[%s6177_s2 + $0x20] sm:$0xff] }
  0x3f   : > { %v6196_v17 = vand.u32 4294901760, %v4913_v13  ;;  %v4942_v21 = vld [vmem:[%s6177_s2 + $0x28] sm:$0xff]  ;;  %v4948_v22 = vpack.c.bf16 %v1529_v9, %v1526_v6  ;;  %v6192_v24 = vand.u32 4294901760, %v4931_v18  ;;  %v6191_v25 = vand.u32 4294901760, %v4937_v20  ;;  %v4961_v26 = vld [vmem:[%s6176_s1 + $0x30] sm:$0xff]  ;;  %v4966_v27 = vld [vmem:[%s6176_s1 + $0x38] sm:$0xff] }
  0x40   : > { %6336 = vst [vmem:[#allocation8_spill] sm:$0xff] %v4924_v15  ;;  %v4954_v23 = vpack.c.bf16 %v6198_v11, %v6201_v10  ;;  %v4971_v28 = vld [vmem:[%s6177_s2 + $0x30] sm:$0xff]  ;;  %4038 = vmatprep.subr.bf16.mxu0 %v4924_v15  ;;  %v6190_v30 = vand.u32 4294901760, %v4942_v21  ;;  %v6189_v31 = vand.u32 4294901760, %v4961_v26  ;;  %v6184_v32 = vand.u32 4294901760, %v4966_v27  ;;  %v4986_v33 = vld [vmem:[%s6177_s2 + $0x38] sm:$0xff] }
  0x41   : > { %6337 = vst [vmem:[#allocation9_spill] sm:$0xff] %v4948_v22  ;;  %v4978_v29 = vpack.c.bf16 %v6196_v17, %v6197_v16  ;;  %v4991_v34 = vld [vmem:[%s6176_s1 + $0x40] sm:$0xff]  ;;  %v4996_v35 = vld [vmem:[%s6176_s1 + $0x48] sm:$0xff]  ;;  %4230 = vmatprep.subr.bf16.mxu1 %v4948_v22  ;;  %4040 = vmatpush3.bf16.msra.mxu0 %v4924_v15  ;;  %v5004_v36 = vpack.c.bf16 %v6192_v24, %v6193_v19  ;;  %v6183_v37 = vand.u32 4294901760, %v4971_v28  ;;  %v6182_v38 = vand.u32 4294901760, %v4986_v33  ;;  %v5022_v42 = vld [vmem:[%s6176_s1 + $0x50] sm:$0xff] }
  0x42   : > { %6338 = vst [vmem:[#allocation10_spill] sm:$0xff] %v4954_v23  ;;  %v6181_v39 = vand.u32 4294901760, %v4991_v34  ;;  %v5012_v40 = vld [vmem:[%s6177_s2 + $0x40] sm:$0xff]  ;;  %v5017_v41 = vld [vmem:[%s6177_s2 + $0x48] sm:$0xff]  ;;  %4232 = vmatpush3.bf16.msra.mxu1 %v4948_v22  ;;  %4042 = vmatprep.subr.bf16.mxu0 %v4954_v23  ;;  %v5030_v43 = vpack.c.bf16 %v6190_v30, %v6191_v25  ;;  %v5036_v44 = vpack.c.bf16 %v6184_v32, %v6189_v31  ;;  %v6180_v45 = vand.u32 4294901760, %v4996_v35  ;;  %v5043_v47 = vld [vmem:[%s6176_s1 + $0x58] sm:$0xff] }
  0x43   : > { %6339 = vst [vmem:[#allocation11_spill] sm:$0xff] %v4978_v29  ;;  %6340 = vst [vmem:[#allocation12_spill] sm:$0xff] %v5004_v36  ;;  %v6186_v46 = vand.u32 4294901760, %v5012_v40  ;;  %v5048_v48 = vld [vmem:[%s6177_s2 + $0x50] sm:$0xff]  ;;  %v5053_v49 = vld [vmem:[%s6177_s2 + $0x58] sm:$0xff]  ;;  %4234 = vmatprep.subr.bf16.mxu1 %v4978_v29  ;;  %v5060_v50 = vpack.c.bf16 %v6182_v38, %v6183_v37  ;;  %v6185_v51 = vand.u32 4294901760, %v5017_v41 }
  0x44   : > { %6341 = vst [vmem:[#allocation13_spill] sm:$0xff] %v5030_v43  ;;  %6342 = vst [vmem:[#allocation14_spill] sm:$0xff] %v5036_v44  ;;  %v6188_v52 = vand.u32 4294901760, %v5022_v42  ;;  %v6187_v53 = vand.u32 4294901760, %v5043_v47  ;;  %v5068_v54 = vld [vmem:[%s6176_s1 + $0x60] sm:$0xff]  ;;  %v5073_v55 = vld [vmem:[%s6176_s1 + $0x68] sm:$0xff]  ;;  %v5084_v57 = vpack.c.bf16 %v6180_v45, %v6181_v39 }
  0x45   : > { %6343 = vst [vmem:[#allocation15_spill] sm:$0xff] %v5060_v50  ;;  %v5078_v56 = vld [vmem:[%s6177_s2 + $0x60] sm:$0xff]  ;;  %v6195_v58 = vand.u32 4294901760, %v5048_v48  ;;  %v6194_v59 = vand.u32 4294901760, %v5053_v49  ;;  %v6200_v60 = vand.u32 4294901760, %v5068_v54  ;;  %v5092_v61 = vld [vmem:[%s6177_s2 + $0x68] sm:$0xff]  ;;  %4044 = vmatpush3.bf16.msra.mxu0 %v4954_v23  ;;  %v5109_v45 = vpack.c.bf16 %v6185_v51, %v6186_v46 }
  0x46   : > { %6344 = vst [vmem:[#allocation16_spill] sm:$0xff] %v5084_v57  ;;  %v5097_v62 = vld [vmem:[%s6176_s1 + $0x70] sm:$0xff]  ;;  %v5102_v63 = vld [vmem:[%s6176_s1 + $0x78] sm:$0xff]  ;;  %v5115_v39 = vpack.c.bf16 %v6187_v53, %v6188_v52  ;;  %v6199_v38 = vand.u32 4294901760, %v5073_v55  ;;  %v6203_v37 = vand.u32 4294901760, %v5078_v56  ;;  %v191_v46 = vld [vmem:[%s4863_s11] sm:$0xff]  ;;  %4236 = vmatpush3.bf16.msra.mxu1 %v4978_v29  ;;  %4046 = vmatprep.subr.bf16.mxu0 %v5004_v36 }
  0x47   : > { %6345 = vst [vmem:[#allocation17_spill] sm:$0xff] %v5109_v45  ;;  %v5122_v32 = vld [vmem:[%s6177_s2 + $0x70] sm:$0xff]  ;;  %v5127_v51 = vld [vmem:[%s6177_s2 + $0x78] sm:$0xff]  ;;  %v5136_v53 = vpack.c.bf16 %v6194_v59, %v6195_v58  ;;  %v6202_v52 = vand.u32 4294901760, %v5092_v61  ;;  %v6207_v31 = vand.u32 4294901760, %v5097_v62  ;;  %v6204_v30 = vand.u32 4294901760, %v5102_v63  ;;  %4238 = vmatprep.subr.bf16.mxu1 %v5030_v43 }
  0x48   : > { %6346 = vst [vmem:[#allocation18_spill] sm:$0xff] %v5115_v39  ;;  %v192_v25 = vld [vmem:[%s4863_s11 + $0x8] sm:$0xff]  ;;  %v5147_v24 = vpack.c.bf16 %v6199_v38, %v6200_v60  ;;  %v6206_v19 = vand.u32 4294901760, %v5122_v32  ;;  %v6205_v59 = vand.u32 4294901760, %v5127_v51  ;;  %v5151_v58 = vand.u32 4294901760, %v191_v46  ;;  %v193_v17 = vld [vmem:[%s4863_s11 + $0x10] sm:$0xff] }
  0x49   : > { %6347 = vst [vmem:[#allocation19_spill] sm:$0xff] %v5136_v53  ;;  %v5158_v16 = vpack.c.bf16 %v6202_v52, %v6203_v37  ;;  %v5164_v11 = vpack.c.bf16 %v6204_v30, %v6207_v31  ;;  %v5166_v38 = vand.u32 4294901760, %v192_v25  ;;  %v5171_v60 = vsub.f32 %v4872_v0, %v224_v3  ;;  %v194_v10 = vld [vmem:[%s4863_s11 + $0x18] sm:$0xff]  ;;  %4048 = vmatpush3.bf16.msra.mxu0 %v5004_v36  ;;  %v195_v23 = vld [vmem:[%s4863_s11 + $0x20] sm:$0xff]  ;;  %s4732_s20 = smov [#allocation5]  }
  0x4a   : > { %6348 = vst [vmem:[#allocation20_spill] sm:$0xff] %v5147_v24  ;;  %6349 = vst [vmem:[#allocation21_spill] sm:$0xff] %v5151_v58  ;;  %v5179_v52 = vpack.c.bf16 %v6205_v59, %v6206_v19  ;;  %v5182_v37 = vsub.f32 %v191_v46, %v5151_v58  ;;  %v5187_v30 = vsub.f32 %v4877_v1, %v227_v4  ;;  %4240 = vmatpush3.bf16.msra.mxu1 %v5030_v43  ;;  %s4665_s22 = sshll.u32 %s4732_s20, 4  ;;  %s4666_s22 = int_to_ptr.vmem [resolvable:$false] %s4665_s22 }
  0x4b   : > { %6350 = vst [vmem:[#allocation22_spill] sm:$0xff] %v5158_v16  ;;  %6351 = vst [vmem:[#allocation23_spill] sm:$0xff] %v5164_v11  ;;  %v5192_v0 = vsub.f32 %v4882_v2, %v1526_v6  ;;  %4050 = vmatprep.subr.bf16.mxu0 %v5036_v44  ;;  %v5197_v3 = vsub.f32 %v192_v25, %v5166_v38  ;;  %v6214_v46 = vand.u32 4294901760, %v5171_v60  ;;  %v5205_v1 = vand.u32 4294901760, %v193_v17  ;;  %s4667_s26 = scalar_lea.vmem %s4666_s22, 16384 }
  0x4c   : > { %6352 = vst [vmem:[#allocation24_spill] sm:$0xff] %v5179_v52  ;;  %6353 = vst [vmem:[#allocation25_spill] sm:$0xff] %v5182_v37  ;;  %v5203_v59 = vsub.f32 %v4889_v5, %v1529_v9  ;;  %4242 = vmatprep.subr.bf16.mxu1 %v5060_v50  ;;  %v5209_v2 = vand.u32 4294901760, %v5182_v37  ;;  %v6219_v4 = vand.u32 4294901760, %v5187_v30  ;;  %v5213_v25 = vand.u32 4294901760, %v194_v10 }
  0x4d   : > { %6354 = vst [vmem:[#allocation26_spill] sm:$0xff] %v5197_v3  ;;  %v5216_v19 = vand.u32 4294901760, %v5197_v3  ;;  %v468_v5 = vsub.f32 %v5171_v60, %v6214_v46  ;;  %v5223_v31 = vsub.f32 %v193_v17, %v5205_v1  ;;  %4052 = vmatpush3.bf16.msra.mxu0 %v5036_v44  ;;  %v6358_v36 = vand.u32 4294901760, %v5192_v0 }
  0x4e   : > { %6355 = vst [vmem:[#allocation27_spill] sm:$0xff] %v5209_v2  ;;  %v307_v6 = vsub.f32 %v5182_v37, %v5209_v2  ;;  %v475_v43 = vsub.f32 %v5187_v30, %v6219_v4  ;;  %v5235_v46 = vsub.f32 %v194_v10, %v5213_v25  ;;  %4244 = vmatpush3.bf16.msra.mxu1 %v5060_v50  ;;  %v6360_v2 = vand.u32 4294901760, %v5203_v59  ;;  %v197_v37 = vld [vmem:[%s4863_s11 + $0x30] sm:$0xff] }
  0x4f   : > { %6356 = vst [vmem:[#allocation28_spill] sm:$0xff] %v5216_v19  ;;  %6357 = vst [vmem:[#allocation29_spill] sm:$0xff] %v5223_v31  ;;  %v1770_v29 = vsub.f32 %v5192_v0, %v6358_v36  ;;  %4054 = vmatprep.subr.bf16.mxu0 %v5084_v57  ;;  %v317_v17 = vsub.f32 %v5197_v3, %v5216_v19  ;;  %v469_v9 = vand.u32 4294901760, %v468_v5  ;;  %v5245_v4 = vand.u32 4294901760, %v5223_v31 }
  0x50   : > { %6359 = vst [vmem:[#allocation30_spill] sm:$0xff] %v5235_v46  ;;  %v1777_v44 = vsub.f32 %v5203_v59, %v6360_v2  ;;  %4246 = vmatprep.subr.bf16.mxu1 %v5109_v45  ;;  %v308_v10 = vand.u32 4294901760, %v307_v6  ;;  %v476_v36 = vand.u32 4294901760, %v475_v43  ;;  %v5250_v22 = vand.u32 4294901760, %v5235_v46 }
  0x51   : > { %6361 = vst [vmem:[#allocation31_spill] sm:$0xff] %v5245_v4  ;;  %v1771_v50 = vand.u32 4294901760, %v1770_v29  ;;  %v5252_v15 = vand.u32 4294901760, %v317_v17  ;;  %v327_v19 = vsub.f32 %v5223_v31, %v5245_v4  ;;  %v6363_v2 = vand.u32 4294901760, %v4895_v7  ;;  %4056 = vmatpush3.bf16.msra.mxu0 %v5084_v57  ;;  %v196_v4 = vld [vmem:[%s4863_s11 + $0x28] sm:$0xff] }
  0x52   : > { %6362 = vst [vmem:[#allocation32_spill] sm:$0xff] %v5250_v22  ;;  %v1778_v5 = vand.u32 4294901760, %v1777_v44  ;;  %3397 = vmatprep.mubr.f32.mxu0 %v308_v10  ;;  %v5262_v6 = vpack.c.bf16 %v476_v36, %v469_v9  ;;  %v337_v29 = vsub.f32 %v5235_v46, %v5250_v22  ;;  %v6364_v43 = vand.u32 4294901760, %v4900_v8  ;;  %4248 = vmatpush3.bf16.msra.mxu1 %v5109_v45 }
  0x53   : > { %v5259_v3 = vsub.f32 %v4895_v7, %v6363_v2  ;;  %v5271_v17 = vand.u32 4294901760, %v195_v23  ;;  %4058 = vmatprep.subr.bf16.mxu0 %v5115_v39  ;;  %v5278_v2 = vand.u32 4294901760, %v327_v19  ;;  %v6365_v36 = vand.u32 4294901760, %v4908_v12  ;;  %4250 = vmatprep.subr.bf16.mxu1 %v5136_v53 }
  0x54   : > { %v5269_v44 = vsub.f32 %v4900_v8, %v6364_v43  ;;  %v5276_v7 = vpack.c.bf16 %v1778_v5, %v1771_v50  ;;  %3733 = vmatprep.mubr.f32.mxu1 %v308_v10  ;;  %v5287_v8 = vand.u32 4294901760, %v337_v29  ;;  %v6366_v45 = vand.u32 4294901760, %v4913_v13 }
  0x55   : > { %v6238_v9 = vand.u32 4294901760, %v5259_v3  ;;  %v5284_v22 = vsub.f32 %v4908_v12, %v6365_v36  ;;  %v5296_v19 = vsub.f32 %v195_v23, %v5271_v17  ;;  %v5302_v36 = vand.u32 4294901760, %v196_v4  ;;  %4060 = vmatpush3.bf16.msra.mxu0 %v5115_v39 }
  0x56   : > { %v6239_v43 = vand.u32 4294901760, %v5269_v44  ;;  %v5293_v50 = vsub.f32 %v4913_v13, %v6366_v45  ;;  %v6369_v10 = vand.u32 4294901760, %v4918_v14  ;;  %4252 = vmatpush3.bf16.msra.mxu1 %v5136_v53  ;;  %4062 = vmatprep.subr.bf16.mxu0 %v5147_v24  ;;  %v6376_v31 = vand.u32 4294901760, %v4937_v20 }
  0x57   : > { %6367 = vst [vmem:[#allocation33_spill] sm:$0xff] %v5296_v19  ;;  %v482_v12 = vsub.f32 %v5259_v3, %v6238_v9  ;;  %6368 = vst [vmem:[#allocation34_spill] sm:$0xff] %v5302_v36  ;;  %v5315_v45 = vand.u32 4294901760, %v5296_v19  ;;  %v6371_v9 = vand.u32 4294901760, %v4931_v18  ;;  %v5328_v23 = vsub.f32 %v196_v4, %v5302_v36  ;;  %4254 = vmatprep.subr.bf16.mxu1 %v5158_v16 }
  0x58   : > { %v5307_v29 = vsub.f32 %v4918_v14, %v6369_v10  ;;  %v489_v13 = vsub.f32 %v5269_v44, %v6239_v43  ;;  %v6372_v10 = vand.u32 4294901760, %v5284_v22 }
  0x59   : > { %6370 = vst [vmem:[#allocation35_spill] sm:$0xff] %v5315_v45  ;;  %v5320_v5 = vsub.f32 %v4931_v18, %v6371_v9  ;;  %v483_v14 = vand.u32 4294901760, %v482_v12  ;;  %6373 = vst [vmem:[#allocation36_spill] sm:$0xff] %v5328_v23  ;;  %v6374_v9 = vand.u32 4294901760, %v5293_v50  ;;  %v347_v57 = vsub.f32 %v5296_v19, %v5315_v45  ;;  %4064 = vmatpush3.bf16.msra.mxu0 %v5147_v24 }
  0x5a   : > { %v1784_v43 = vsub.f32 %v5284_v22, %v6372_v10  ;;  %v6258_v39 = vand.u32 4294901760, %v5307_v29  ;;  %v490_v18 = vand.u32 4294901760, %v489_v13  ;;  %v5339_v10 = vand.u32 4294901760, %v5328_v23  ;;  %4256 = vmatpush3.bf16.msra.mxu1 %v5158_v16  ;;  %4066 = vmatprep.subr.bf16.mxu0 %v5164_v11 }
  0x5b   : > { %v1791_v53 = vsub.f32 %v5293_v50, %v6374_v9  ;;  %v5347_v13 = vsub.f32 %v4937_v20, %v6376_v31  ;;  %v198_v9 = vld [vmem:[%s4863_s11 + $0x38] sm:$0xff]  ;;  %v6377_v19 = vand.u32 4294901760, %v5320_v5  ;;  %4258 = vmatprep.subr.bf16.mxu1 %v5179_v52 }
  0x5c   : > { %v1785_v46 = vand.u32 4294901760, %v1784_v43  ;;  %6375 = vst [vmem:[#allocation37_spill] sm:$0xff] %v5339_v10  ;;  %v496_v4 = vsub.f32 %v5307_v29, %v6258_v39  ;;  %v5352_v45 = vpack.c.bf16 %v490_v18, %v483_v14  ;;  %v5354_v43 = vand.u32 4294901760, %v347_v57 }
  0x5d   : > { %v1792_v12 = vand.u32 4294901760, %v1791_v53  ;;  %v503_v36 = vsub.f32 %v5320_v5, %v6377_v19  ;;  %v357_v20 = vsub.f32 %v5328_v23, %v5339_v10  ;;  %v6267_v39 = vand.u32 4294901760, %v5347_v13  ;;  %4068 = vmatpush3.bf16.msra.mxu0 %v5164_v11 }
  0x5e   : > { %v497_v31 = vand.u32 4294901760, %v496_v4  ;;  %v6378_v14 = vand.u32 4294901760, %v4942_v21  ;;  %v5370_v18 = vand.u32 4294901760, %v197_v37  ;;  %v5372_v16 = vand.u32 4294901760, %v198_v9  ;;  %4260 = vmatpush3.bf16.msra.mxu1 %v5179_v52  ;;  %4070 = vmatprep.subr.bf16.mxu0 %v5262_v6 }
  0x5f   : > { %v4265_v57 = vpack.c.bf16 %v1792_v12, %v1785_v46  ;;  %v504_v19 = vand.u32 4294901760, %v503_v36  ;;  %v5374_v24 = vand.u32 4294901760, %v357_v20  ;;  %v1798_v4 = vsub.f32 %v5347_v13, %v6267_v39  ;;  %v199_v39 = vld [vmem:[%s4863_s11 + $0x40] sm:$0xff]  ;;  %4262 = vmatprep.subr.bf16.mxu1 %v5276_v7 }
  0x60   : > { %v5367_v53 = vsub.f32 %v4942_v21, %v6378_v14  ;;  %6379 = vst [vmem:[#allocation38_spill] sm:$0xff] %v5372_v16  ;;  %v6380_v23 = vand.u32 4294901760, %v4961_v26  ;;  %v5389_v36 = vsub.f32 %v197_v37, %v5370_v18  ;;  %v5392_v12 = vsub.f32 %v198_v9, %v5372_v16  ;;  %3398 = vmatmul.mubr.f32.vlgmr.msra.gmra.mrb[0].mxu0 %v5252_v15  ;;  %v200_v16 = vld [vmem:[%s4863_s11 + $0x48] sm:$0xff] }
  0x61   : > { %v5386_v46 = vpack.c.bf16 %v504_v19, %v497_v31  ;;  %v6383_v20 = vand.u32 4294901760, %v4966_v27  ;;  %v6384_v9 = vand.u32 4294901760, %v4971_v28  ;;  %v5429_v11 = vand.u32 4294901760, %v199_v39  ;;  %3734 = vmatmul.mubr.f32.vlgmr.msra.gmra.mrb[0].mxu1 %v5252_v15  ;;  %4072 = vmatpush3.bf16.msra.mxu0 %v5262_v6 }
  0x62   : > { %v6268_v10 = vand.u32 4294901760, %v5367_v53  ;;  %v5383_v21 = vsub.f32 %v4961_v26, %v6380_v23  ;;  %6381 = vst [vmem:[#allocation39_spill] sm:$0xff] %v5389_v36  ;;  %6382 = vst [vmem:[#allocation40_spill] sm:$0xff] %v5392_v12  ;;  %v1799_v26 = vand.u32 4294901760, %v1798_v4  ;;  %v5416_v19 = vand.u32 4294901760, %v5392_v12  ;;  %4264 = vmatpush3.bf16.msra.mxu1 %v5276_v7  ;;  %3400 = vmatprep.mubr.f32.mxu0 %v5278_v2 }
  0x63   : > { %v5397_v14 = vsub.f32 %v4966_v27, %v6383_v20  ;;  %v5409_v31 = vsub.f32 %v4971_v28, %v6384_v9  ;;  %v5413_v27 = vand.u32 4294901760, %v5389_v36  ;;  %v6387_v20 = vand.u32 4294901760, %v4986_v33  ;;  %6388 = vst [vmem:[#allocation43_spill] sm:$0xff] %v5429_v11  ;;  %3736 = vmatprep.mubr.f32.mxu1 %v5278_v2  ;;  %4074 = vmatprep.subr.bf16.mxu0 %v5352_v45 }
  0x64   : > { %v1805_v23 = vsub.f32 %v5367_v53, %v6268_v10  ;;  %v6273_v37 = vand.u32 4294901760, %v5383_v21  ;;  %6386 = vst [vmem:[#allocation42_spill] sm:$0xff] %v5416_v19  ;;  %3401 = vmatmul.mubr.f32.gmra.mrb[2].mxu0 %v5287_v8  ;;  %4266 = vmatprep.subr.bf16.mxu1 %v4265_v57  ;;  %v6393_v2 = vand.u32 4294901760, %v4991_v34 }
  0x65   : > { %6385 = vst [vmem:[#allocation41_spill] sm:$0xff] %v5413_v27  ;;  %v5422_v10 = vsub.f32 %v4986_v33, %v6387_v20  ;;  %v6282_v52 = vand.u32 4294901760, %v5409_v31  ;;  %v367_v4 = vsub.f32 %v5389_v36, %v5413_v27  ;;  %v377_v33 = vsub.f32 %v5392_v12, %v5416_v19  ;;  %3737 = vmatmul.mubr.f32.gmra.mrb[2].mxu1 %v5287_v8 }
  0x66   : > { %v1806_v28 = vand.u32 4294901760, %v1805_v23  ;;  %v510_v9 = vsub.f32 %v5383_v21, %v6273_v37  ;;  %v6389_v23 = vand.u32 4294901760, %v5397_v14  ;;  %v5448_v19 = vsub.f32 %v199_v39, %v5429_v11  ;;  %4076 = vmatpush3.bf16.msra.mxu0 %v5352_v45  ;;  %4268 = vmatpush3.bf16.msra.mxu1 %v4265_v57 }
  0x67   : > { %v1812_v27 = vsub.f32 %v5409_v31, %v6282_v52  ;;  %v378_v37 = vand.u32 4294901760, %v377_v33  ;;  %v6391_v7 = vand.u32 4294901760, %v5422_v10  ;;  %v5459_v39 = vand.u32 4294901760, %v200_v16  ;;  %v201_v33 = vld [vmem:[%s4863_s11 + $0x50] sm:$0xff]  ;;  %3403 = vmatprep.mubr.f32.mxu0 %v5354_v43  ;;  %3739 = vmatprep.mubr.f32.mxu1 %v5354_v43 }
  0x68   : > { %v517_v20 = vsub.f32 %v5397_v14, %v6389_v23  ;;  %v4269_v15 = vpack.c.bf16 %v1806_v28, %v1799_v26  ;;  %v511_v6 = vand.u32 4294901760, %v510_v9  ;;  %6390 = vst [vmem:[#allocation44_spill] sm:$0xff] %v5448_v19  ;;  %v368_v23 = vand.u32 4294901760, %v367_v4  ;;  %4078 = vmatprep.subr.bf16.mxu0 %v5386_v46  ;;  %3404 = vmatmul.mubr.f32.gmra.mrb[4].mxu0 %v5374_v24 }
  0x69   : > { %v1819_v26 = vsub.f32 %v5422_v10, %v6391_v7  ;;  %v1813_v28 = vand.u32 4294901760, %v1812_v27  ;;  %v5457_v9 = vand.u32 4294901760, %v5448_v19  ;;  %v5464_v4 = vsub.f32 %v4991_v34, %v6393_v2  ;;  %3740 = vmatmul.mubr.f32.gmra.mrb[4].mxu1 %v5374_v24 }
  0x6a   : > { %v518_v12 = vand.u32 4294901760, %v517_v20  ;;  %v6394_v27 = vand.u32 4294901760, %v4996_v35  ;;  %v6395_v36 = vand.u32 4294901760, %v5012_v40  ;;  %v5483_v8 = vsub.f32 %v200_v16, %v5459_v39  ;;  %4270 = vmatprep.subr.bf16.mxu1 %v4269_v15  ;;  %4080 = vmatpush3.bf16.msra.mxu0 %v5386_v46 }
  0x6b   : > { %6392 = vst [vmem:[#allocation45_spill] sm:$0xff] %v5457_v9  ;;  %v1820_v7 = vand.u32 4294901760, %v1819_v26  ;;  %v387_v34 = vsub.f32 %v5448_v19, %v5457_v9  ;;  %v6289_v45 = vand.u32 4294901760, %v5464_v4  ;;  %v5496_v26 = vand.u32 4294901760, %v201_v33  ;;  %4272 = vmatpush3.bf16.msra.mxu1 %v4269_v15  ;;  %3406 = vmatprep.mubr.f32.mxu0 %v368_v23  ;;  %v204_v9 = vld [vmem:[%s4863_s11 + $0x68] sm:$0xff] }
  0x6c   : > { %v4081_v20 = vpack.c.bf16 %v518_v12, %v511_v6  ;;  %v5472_v52 = vsub.f32 %v4996_v35, %v6394_v27  ;;  %v5477_v11 = vsub.f32 %v5012_v40, %v6395_v36  ;;  %6396 = vst [vmem:[#allocation46_spill] sm:$0xff] %v5483_v8  ;;  %v6397_v12 = vand.u32 4294901760, %v5017_v41  ;;  %v202_v6 = vld [vmem:[%s4863_s11 + $0x58] sm:$0xff]  ;;  %3742 = vmatprep.mubr.f32.mxu1 %v368_v23 }
  0x6d   : > { %v4273_v40 = vpack.c.bf16 %v1820_v7, %v1813_v28  ;;  %v388_v16 = vand.u32 4294901760, %v387_v34  ;;  %v5500_v2 = vand.u32 4294901760, %v5483_v8  ;;  %v5515_v27 = vsub.f32 %v201_v33, %v5496_v26  ;;  %3407 = vmatmul.mubr.f32.gmra.mrb[6].mxu0 %v378_v37  ;;  %3743 = vmatmul.mubr.f32.gmra.mrb[6].mxu1 %v378_v37 }
  0x6e   : > { %v5489_v35 = vsub.f32 %v5017_v41, %v6397_v12  ;;  %v6287_v57 = vand.u32 4294901760, %v5472_v52  ;;  %v6288_v36 = vand.u32 4294901760, %v5477_v11  ;;  %v524_v41 = vsub.f32 %v5464_v4, %v6289_v45  ;;  %4082 = vmatprep.subr.bf16.mxu0 %v4081_v20 }
  0x6f   : > { %6398 = vst [vmem:[#allocation47_spill] sm:$0xff] %v5500_v2  ;;  %6399 = vst [vmem:[#allocation48_spill] sm:$0xff] %v5515_v27  ;;  %v5517_v34 = vand.u32 4294901760, %v202_v6  ;;  %v397_v24 = vsub.f32 %v5483_v8, %v5500_v2  ;;  %v5530_v15 = vand.u32 4294901760, %v5515_v27  ;;  %4274 = vmatprep.subr.bf16.mxu1 %v4273_v40  ;;  %4084 = vmatpush3.bf16.msra.mxu0 %v4081_v20 }
  0x70   : > { %v6292_v43 = vand.u32 4294901760, %v5489_v35  ;;  %v531_v28 = vsub.f32 %v5472_v52, %v6287_v57  ;;  %v1826_v7 = vsub.f32 %v5477_v11, %v6288_v36  ;;  %v525_v46 = vand.u32 4294901760, %v524_v41  ;;  %4276 = vmatpush3.bf16.msra.mxu1 %v4273_v40  ;;  %3409 = vmatprep.mubr.f32.mxu0 %v388_v16 }
  0x71   : > { %v6400_v57 = vand.u32 4294901760, %v5022_v42  ;;  %6401 = vst [vmem:[#allocation49_spill] sm:$0xff] %v5530_v15  ;;  %v5533_v2 = vsub.f32 %v202_v6, %v5517_v34  ;;  %v398_v41 = vand.u32 4294901760, %v397_v24  ;;  %v6405_v24 = vand.u32 4294901760, %v5048_v48  ;;  %3745 = vmatprep.mubr.f32.mxu1 %v388_v16 }
  0x72   : > { %v1833_v12 = vsub.f32 %v5489_v35, %v6292_v43  ;;  %v532_v33 = vand.u32 4294901760, %v531_v28  ;;  %v1827_v45 = vand.u32 4294901760, %v1826_v7  ;;  %v407_v7 = vsub.f32 %v5515_v27, %v5530_v15 }
  0x73   : > { %v5527_v36 = vsub.f32 %v5022_v42, %v6400_v57  ;;  %6402 = vst [vmem:[#allocation50_spill] sm:$0xff] %v5533_v2  ;;  %v6403_v42 = vand.u32 4294901760, %v5043_v47  ;;  %v203_v57 = vld [vmem:[%s4863_s11 + $0x60] sm:$0xff]  ;;  %v5545_v6 = vand.u32 4294901760, %v5533_v2  ;;  %3410 = vmatmul.mubr.f32.gmra.mrb[8].mxu0 %v398_v41  ;;  %3746 = vmatmul.mubr.f32.gmra.mrb[8].mxu1 %v398_v41 }
  0x74   : > { %v1834_v43 = vand.u32 4294901760, %v1833_v12  ;;  %v4085_v28 = vpack.c.bf16 %v532_v33, %v525_v46  ;;  %v5550_v12 = vsub.f32 %v5048_v48, %v6405_v24  ;;  %v6407_v46 = vand.u32 4294901760, %v5053_v49 }
  0x75   : > { %v5539_v23 = vsub.f32 %v5043_v47, %v6403_v42  ;;  %6404 = vst [vmem:[#allocation51_spill] sm:$0xff] %v5545_v6  ;;  %v6406_v42 = vand.u32 4294901760, %v5527_v36  ;;  %v408_v15 = vand.u32 4294901760, %v407_v7  ;;  %v417_v48 = vsub.f32 %v5533_v2, %v5545_v6 }
  0x76   : > { %v4277_v47 = vpack.c.bf16 %v1834_v43, %v1827_v45  ;;  %v5560_v33 = vsub.f32 %v5053_v49, %v6407_v46  ;;  %4086 = vmatprep.subr.bf16.mxu0 %v4085_v28  ;;  %v6300_v40 = vand.u32 4294901760, %v5550_v12  ;;  %v5565_v45 = vand.u32 4294901760, %v203_v57 }
  0x77   : > { %v538_v37 = vsub.f32 %v5527_v36, %v6406_v42  ;;  %v6299_v20 = vand.u32 4294901760, %v5539_v23  ;;  %v5571_v42 = vand.u32 4294901760, %v204_v9  ;;  %4088 = vmatpush3.bf16.msra.mxu0 %v4085_v28  ;;  %v418_v16 = vand.u32 4294901760, %v417_v48  ;;  %3412 = vmatprep.mubr.f32.mxu0 %v408_v15 }
  0x78   : > { %4278 = vmatprep.subr.bf16.mxu1 %v4277_v47  ;;  %v6301_v49 = vand.u32 4294901760, %v5560_v33  ;;  %v1840_v7 = vsub.f32 %v5550_v12, %v6300_v40  ;;  %v5577_v46 = vsub.f32 %v203_v57, %v5565_v45  ;;  %v6411_v48 = vand.u32 4294901760, %v5073_v55  ;;  %3748 = vmatprep.mubr.f32.mxu1 %v408_v15 }
  0x79   : > { %v539_v43 = vand.u32 4294901760, %v538_v37  ;;  %v545_v24 = vsub.f32 %v5539_v23, %v6299_v20  ;;  %v6409_v37 = vand.u32 4294901760, %v5068_v54  ;;  %4280 = vmatpush3.bf16.msra.mxu1 %v4277_v47  ;;  %v5588_v28 = vsub.f32 %v204_v9, %v5571_v42  ;;  %v205_v9 = vld [vmem:[%s4863_s11 + $0x70] sm:$0xff]  ;;  %3413 = vmatmul.mubr.f32.gmra.mrb[10].mxu0 %v418_v16 }
  0x7a   : > { %6408 = vst [vmem:[#allocation52_spill] sm:$0xff] %v5577_v46  ;;  %v1847_v41 = vsub.f32 %v5560_v33, %v6301_v49  ;;  %v5593_v57 = vsub.f32 %v5073_v55, %v6411_v48  ;;  %v1841_v40 = vand.u32 4294901760, %v1840_v7  ;;  %3749 = vmatmul.mubr.f32.gmra.mrb[10].mxu1 %v418_v16 }
  0x7b   : > { %v5582_v6 = vsub.f32 %v5068_v54, %v6409_v37  ;;  %v546_v20 = vand.u32 4294901760, %v545_v24  ;;  %6410 = vst [vmem:[#allocation53_spill] sm:$0xff] %v5588_v28  ;;  %v5596_v54 = vand.u32 4294901760, %v5577_v46  ;;  %v6413_v24 = vand.u32 4294901760, %v5078_v56 }
  0x7c   : > { %v1848_v2 = vand.u32 4294901760, %v1847_v41  ;;  %v5606_v55 = vand.u32 4294901760, %v5588_v28  ;;  %v6315_v15 = vand.u32 4294901760, %v5593_v57 }
  0x7d   : > { %6412 = vst [vmem:[#allocation54_spill] sm:$0xff] %v5596_v54  ;;  %v6308_v47 = vand.u32 4294901760, %v5582_v6  ;;  %v5602_v37 = vsub.f32 %v5078_v56, %v6413_v24  ;;  %v4089_v49 = vpack.c.bf16 %v546_v20, %v539_v43  ;;  %v427_v7 = vsub.f32 %v5577_v46, %v5596_v54  ;;  %v206_v43 = vld [vmem:[%s4863_s11 + $0x78] sm:$0xff]  ;;  %s2971_s11 = sshll.u32 %s4859_s5, 9 }
  0x7e   : > { %6414 = vst [vmem:[#allocation55_spill] sm:$0xff] %v5606_v55  ;;  %v6415_v24 = vand.u32 4294901760, %v5092_v61  ;;  %v4281_v41 = vpack.c.bf16 %v1848_v2, %v1841_v40  ;;  %v437_v16 = vsub.f32 %v5588_v28, %v5606_v55  ;;  %v559_v54 = vsub.f32 %v5593_v57, %v6315_v15  ;;  %s6058_s4 = scalar_lea.vmem [#allocation5], %s2971_s11 }
  0x7f   : > { %v552_v48 = vsub.f32 %v5582_v6, %v6308_v47  ;;  %4090 = vmatprep.subr.bf16.mxu0 %v4089_v49  ;;  %v5626_v46 = vand.u32 4294901760, %v205_v9  ;;  %v428_v47 = vand.u32 4294901760, %v427_v7  ;;  %v6416_v27 = vand.u32 4294901760, %v5602_v37  ;;  %s2890_s7 = sshll.u32 %s6058_s4, 4  ;;  %s6126_s7 = int_to_ptr.vmem [resolvable:$true] %s2890_s7 }
  0x80   : > { %v5618_v20 = vsub.f32 %v5092_v61, %v6415_v24  ;;  %4092 = vmatpush3.bf16.msra.mxu0 %v4089_v49  ;;  %4282 = vmatprep.subr.bf16.mxu1 %v4281_v41  ;;  %v438_v2 = vand.u32 4294901760, %v437_v16  ;;  %v560_v40 = vand.u32 4294901760, %v559_v54  ;;  %v5635_v28 = vand.u32 4294901760, %v206_v43  ;;  %s4661_s23 = scalar_lea.vmem %s6126_s7, 8192  ;;  %p4668_p8 = scmp.lt.s32.totalorder %s6126_s7, %s4666_s22 }
  0x81   : > { %v553_v56 = vand.u32 4294901760, %v552_v48  ;;  %v1854_v61 = vsub.f32 %v5602_v37, %v6416_v27  ;;  %v5633_v55 = vsub.f32 %v205_v9, %v5626_v46  ;;  %4284 = vmatpush3.bf16.msra.mxu1 %v4281_v41  ;;  %3415 = vmatprep.mubr.f32.mxu0 %v428_v47  ;;  %v6419_v7 = vand.u32 4294901760, %v5097_v62  ;;  %p4662_p6 = scmp.ne.s32.totalorder %s6126_s7, %s4661_s23  ;;  %p4669_p10 = scmp.lt.s32.totalorder %s4667_s26, %s4661_s23 }
  0x82   : > { %v6316_v24 = vand.u32 4294901760, %v5618_v20  ;;  %6418 = vst [vmem:[#allocation57_spill] sm:$0xff] %v5635_v28  ;;  %v6420_v48 = vand.u32 4294901760, %v5102_v63  ;;  %3751 = vmatprep.mubr.f32.mxu1 %v428_v47  ;;  %3416 = vmatmul.mubr.f32.gmra.mrb[12].mxu0 %v438_v2  ;;  %v5654_v16 = vsub.f32 %v206_v43, %v5635_v28  ;;  %v6423_v47 = vand.u32 4294901760, %v5127_v51 }
  0x83   : > { %6417 = vst [vmem:[#allocation56_spill] sm:$0xff] %v5633_v55  ;;  %v1855_v15 = vand.u32 4294901760, %v1854_v61  ;;  %v5643_v27 = vsub.f32 %v5097_v62, %v6419_v7  ;;  %v4093_v9 = vpack.c.bf16 %v560_v40, %v553_v56  ;;  %v5651_v41 = vand.u32 4294901760, %v5633_v55  ;;  %3752 = vmatmul.mubr.f32.gmra.mrb[12].mxu1 %v438_v2  ;;  %p4663_p12 = pnand %p4662_p6, %p6505_p11  ;;  %p4670_p0 = por %p4669_p10, %p4668_p8 }
  0x84   : > { %v1861_v49 = vsub.f32 %v5618_v20, %v6316_v24  ;;  %v5648_v54 = vsub.f32 %v5102_v63, %v6420_v48  ;;  %v6422_v61 = vand.u32 4294901760, %v5122_v32  ;;  %v5666_v56 = vsub.f32 %v5127_v51, %v6423_v47 }
  0x85   : > { %6421 = vst [vmem:[#allocation58_spill] sm:$0xff] %v5651_v41  ;;  %v565_v7 = vand.u32 4294901760, %v5643_v27  ;;  %4094 = vmatprep.subr.bf16.mxu0 %v4093_v9  ;;  %v447_v43 = vsub.f32 %v5633_v55, %v5651_v41  ;;  %v5671_v40 = vand.u32 4294901760, %v5654_v16  ;;  %p4664_p13 = pneg %p4663_p12 }
  0x86   : > { %v5659_v24 = vsub.f32 %v5122_v32, %v6422_v61  ;;  %v1862_v62 = vand.u32 4294901760, %v1861_v49  ;;  %v572_v63 = vand.u32 4294901760, %v5648_v54  ;;  %4096 = vmatpush3.bf16.msra.mxu0 %v4093_v9  ;;  %v1874_v61 = vand.u32 4294901760, %v5666_v56 }
  0x87   : > { %6424 = vst [vmem:[#allocation59_spill] sm:$0xff] %v5671_v40  ;;  %v566_v49 = vsub.f32 %v5643_v27, %v565_v7  ;;  %v448_v8 = vand.u32 4294901760, %v447_v43  ;;  %v457_v51 = vsub.f32 %v5654_v16, %v5671_v40  ;;  %v4101_v43 = vpack.c.bf16 %v5187_v30, %v5171_v60  ;;  %p4671_p2 = pnand %p4670_p0, %p4664_p13 }
  0x88   : > { %v1867_v32 = vand.u32 4294901760, %v5659_v24  ;;  %v4285_v2 = vpack.c.bf16 %v1862_v62, %v1855_v15  ;;  %v573_v48 = vsub.f32 %v5648_v54, %v572_v63  ;;  %v1875_v19 = vsub.f32 %v5666_v56, %v1874_v61 }
  0x89   : > { %v567_v41 = vand.u32 4294901760, %v566_v49  ;;  %3418 = vmatprep.mubr.f32.mxu0 %v448_v8  ;;  %v458_v15 = vand.u32 4294901760, %v457_v51  ;;  %3754 = vmatprep.mubr.f32.mxu1 %v448_v8  ;;  %v4293_v49 = vpack.c.bf16 %v5203_v59, %v5192_v0  ;;  %v4105_v8 = vpack.c.bf16 %v5269_v44, %v5259_v3 }
  0x8a   : > { %v1868_v47 = vsub.f32 %v5659_v24, %v1867_v32  ;;  %4286 = vmatprep.subr.bf16.mxu1 %v4285_v2  ;;  %v574_v55 = vand.u32 4294901760, %v573_v48  ;;  %v1876_v28 = vand.u32 4294901760, %v1875_v19  ;;  %v4297_v19 = vpack.c.bf16 %v5293_v50, %v5284_v22 }
  0x8b   : > { %4288 = vmatpush3.bf16.msra.mxu1 %v4285_v2  ;;  %3419 = vmatmul.mubr.f32.gmra.mrb[14].mxu0 %v458_v15  ;;  %v6427_v48 = vand.u32 4294901760, %v5192_v0  ;;  %v6428_v51 = vand.u32 4294901760, %v5203_v59  ;;  %v6434_v0 = vand.u32 4294901760, %v5320_v5 }
  0x8c   : > { %v1869_v9 = vand.u32 4294901760, %v1868_v47  ;;  %v4097_v62 = vpack.c.bf16 %v574_v55, %v567_v41  ;;  %3755 = vmatmul.mubr.f32.gmra.mrb[14].mxu1 %v458_v15  ;;  %3453 = vmatprep.mubr.f32.mxu0 %v5151_v58  ;;  %v4109_v55 = vpack.c.bf16 %v5320_v5, %v5307_v29  ;;  %v6426_v41 = vand.u32 4294901760, %v5187_v30 }
  0x8d   : > { %3789 = vmatprep.mubr.f32.mxu1 %v5151_v58  ;;  %v5703_v47 = vpack.c.bf16 %v6428_v51, %v6427_v48  ;;  %v6429_v15 = vand.u32 4294901760, %v5259_v3  ;;  %v6431_v58 = vand.u32 4294901760, %v5284_v22  ;;  %v6436_v3 = vand.u32 4294901760, %v5367_v53 }
  0x8e   : > { %4098 = vmatprep.subr.bf16.mxu0 %v4097_v62  ;;  %v4289_v40 = vpack.c.bf16 %v1876_v28, %v1869_v9  ;;  %v6425_v28 = vand.u32 4294901760, %v5171_v60  ;;  %v6430_v9 = vand.u32 4294901760, %v5269_v44  ;;  %v6432_v60 = vand.u32 4294901760, %v5293_v50 }
  0x8f   : > { %4100 = vmatpush3.bf16.msra.mxu0 %v4097_v62  ;;  %v6437_v22 = vand.u32 4294901760, %v5383_v21  ;;  %v6439_v50 = vand.u32 4294901760, %v5409_v31  ;;  %v6440_v5 = vand.u32 4294901760, %v5422_v10  ;;  %v6441_v48 = vand.u32 4294901760, %v5464_v4 }
  0x90   : > { %4290 = vmatprep.subr.bf16.mxu1 %v4289_v40  ;;  %4102 = vmatprep.subr.bf16.mxu0 %v4101_v43  ;;  %v5697_v2 = vpack.c.bf16 %v6426_v41, %v6425_v28  ;;  %v5709_v62 = vpack.c.bf16 %v6430_v9, %v6429_v15  ;;  %v5715_v30 = vpack.c.bf16 %v6432_v60, %v6431_v58  ;;  %v6433_v28 = vand.u32 4294901760, %v5307_v29 }
  0x91   : > { %4292 = vmatpush3.bf16.msra.mxu1 %v4289_v40  ;;  %v6435_v40 = vand.u32 4294901760, %v5347_v13  ;;  %v6438_v58 = vand.u32 4294901760, %v5397_v14  ;;  %v5740_v29 = vpack.c.bf16 %v6440_v5, %v6439_v50  ;;  %v6442_v51 = vand.u32 4294901760, %v5472_v52 }
  0x92   : > { %v5721_v59 = vpack.c.bf16 %v6434_v0, %v6433_v28  ;;  %3454 = vmatmul.mubr.f32.vlgmr.msra.gmra.mrb[0].mxu0 %v5166_v38  ;;  %4294 = vmatprep.subr.bf16.mxu1 %v4293_v49  ;;  %v6443_v9 = vand.u32 4294901760, %v5477_v11  ;;  %v6444_v60 = vand.u32 4294901760, %v5489_v35  ;;  %v6445_v0 = vand.u32 4294901760, %v5527_v36 }
  0x93   : > { %v5727_v41 = vpack.c.bf16 %v6436_v3, %v6435_v40  ;;  %v5734_v44 = vpack.c.bf16 %v6438_v58, %v6437_v22  ;;  %v5746_v15 = vpack.c.bf16 %v6442_v51, %v6441_v48  ;;  %4104 = vmatpush3.bf16.msra.mxu0 %v4101_v43  ;;  %3456 = vmatprep.mubr.f32.mxu0 %v5205_v1  ;;  %v6446_v40 = vand.u32 4294901760, %v5539_v23 }
  0x94   : > { %v5753_v28 = vpack.c.bf16 %v6444_v60, %v6443_v9  ;;  %v6447_v22 = vand.u32 4294901760, %v5550_v12  ;;  %v6448_v58 = vand.u32 4294901760, %v5560_v33  ;;  %3790 = vmatmul.mubr.f32.vlgmr.msra.gmra.mrb[0].mxu1 %v5166_v38  ;;  %4106 = vmatprep.subr.bf16.mxu0 %v4105_v8  ;;  %v6449_v43 = vand.u32 4294901760, %v5582_v6 }
  0x95   : > { %v5759_v3 = vpack.c.bf16 %v6446_v40, %v6445_v0  ;;  %v6450_v5 = vand.u32 4294901760, %v5593_v57  ;;  %v6451_v51 = vand.u32 4294901760, %v5602_v37  ;;  %v6452_v9 = vand.u32 4294901760, %v5618_v20  ;;  %4296 = vmatpush3.bf16.msra.mxu1 %v4293_v49  ;;  %3792 = vmatprep.mubr.f32.mxu1 %v5205_v1  ;;  %v6469_v49 = vld [vmem:[#allocation39_spill] sm:$0xff] }
  0x96   : > { %v5765_v50 = vpack.c.bf16 %v6448_v58, %v6447_v22  ;;  %v5780_v0 = vpack.c.bf16 %v572_v63, %v565_v7  ;;  %v5783_v40 = vpack.c.bf16 %v1874_v61, %v1867_v32  ;;  %3457 = vmatmul.mubr.f32.gmra.mrb[2].mxu0 %v5213_v25  ;;  %4298 = vmatprep.subr.bf16.mxu1 %v4297_v19  ;;  %v6453_v63 = vld [vmem:[#allocation34_spill] sm:$0xff]  ;;  %v6468_v61 = vld [vmem:[#allocation13_spill] sm:$0xff]  ;;  %v6473_v58 = vld [vmem:[#allocation44_spill] sm:$0xff] }
  0x97   : > { %v5772_v48 = vpack.c.bf16 %v6450_v5, %v6449_v43  ;;  %v5778_v60 = vpack.c.bf16 %v6452_v9, %v6451_v51  ;;  %v4301_v22 = vpack.c.bf16 %v5367_v53, %v5347_v13  ;;  %4108 = vmatpush3.bf16.msra.mxu0 %v4105_v8  ;;  %3459 = vmatprep.mubr.f32.mxu0 %v5271_v17  ;;  %v6454_v53 = vld [vmem:[#allocation38_spill] sm:$0xff]  ;;  %v6474_v43 = vld [vmem:[#allocation16_spill] sm:$0xff]  ;;  %v6476_v51 = vld [vmem:[#allocation17_spill] sm:$0xff] }
  0x98   : > { %3793 = vmatmul.mubr.f32.gmra.mrb[2].mxu1 %v5213_v25  ;;  %4110 = vmatprep.subr.bf16.mxu0 %v4109_v55  ;;  %v4113_v7 = vpack.c.bf16 %v5397_v14, %v5383_v21  ;;  %v4305_v32 = vpack.c.bf16 %v5422_v10, %v5409_v31  ;;  %v4117_v13 = vpack.c.bf16 %v5472_v52, %v5464_v4  ;;  %v6455_v10 = vld [vmem:[#allocation43_spill] sm:$0xff]  ;;  %v6470_v8 = vld [vmem:[#allocation14_spill] sm:$0xff]  ;;  %v6477_v9 = vld [vmem:[#allocation48_spill] sm:$0xff] }
  0x99   : > { %4300 = vmatpush3.bf16.msra.mxu1 %v4297_v19  ;;  %3795 = vmatprep.mubr.f32.mxu1 %v5271_v17  ;;  %v4309_v21 = vpack.c.bf16 %v5489_v35, %v5477_v11  ;;  %v4121_v14 = vpack.c.bf16 %v5539_v23, %v5527_v36  ;;  %v4313_v52 = vpack.c.bf16 %v5560_v33, %v5550_v12  ;;  %v6456_v36 = vld [vmem:[#allocation57_spill] sm:$0xff]  ;;  %v6459_v12 = vld [vmem:[#allocation26_spill] sm:$0xff]  ;;  %v6471_v19 = vld [vmem:[#allocation40_spill] sm:$0xff] }
  0x9a   : > { %3460 = vmatmul.mubr.f32.gmra.mrb[4].mxu0 %v6453_v63  ;;  %4302 = vmatprep.subr.bf16.mxu1 %v4301_v22  ;;  %v4125_v11 = vpack.c.bf16 %v5593_v57, %v5582_v6  ;;  %v4317_v31 = vpack.c.bf16 %v5618_v20, %v5602_v37  ;;  %v4129_v4 = vpack.c.bf16 %v5648_v54, %v5643_v27  ;;  %v6457_v23 = vld [vmem:[#allocation25_spill] sm:$0xff]  ;;  %v6458_v6 = vld [vmem:[#allocation8_spill] sm:$0xff]  ;;  %v6462_v37 = vld [vmem:[#allocation10_spill] sm:$0xff] }
  0x9b   : > { %4112 = vmatpush3.bf16.msra.mxu0 %v4109_v55  ;;  %3462 = vmatprep.mubr.f32.mxu0 %v5370_v18  ;;  %v4321_v35 = vpack.c.bf16 %v5666_v56, %v5659_v24  ;;  %v6460_v33 = vld [vmem:[#allocation9_spill] sm:$0xff]  ;;  %v6463_v20 = vld [vmem:[#allocation30_spill] sm:$0xff]  ;;  %v6464_v24 = vld [vmem:[#allocation11_spill] sm:$0xff] }
  0x9c   : > { %3796 = vmatmul.mubr.f32.gmra.mrb[4].mxu1 %v6453_v63  ;;  %4114 = vmatprep.subr.bf16.mxu0 %v4113_v7  ;;  %v6461_v57 = vld [vmem:[#allocation29_spill] sm:$0xff]  ;;  %v6466_v54 = vld [vmem:[#allocation12_spill] sm:$0xff]  ;;  %v6472_v55 = vld [vmem:[#allocation15_spill] sm:$0xff] }
  0x9d   : > { %4304 = vmatpush3.bf16.msra.mxu1 %v4301_v22  ;;  %3798 = vmatprep.mubr.f32.mxu1 %v5370_v18  ;;  %v6465_v27 = vld [vmem:[#allocation33_spill] sm:$0xff]  ;;  %v6467_v56 = vld [vmem:[#allocation36_spill] sm:$0xff]  ;;  %v6475_v5 = vld [vmem:[#allocation46_spill] sm:$0xff] }
  0x9e   : > { %3463 = vmatmul.mubr.f32.gmra.mrb[6].mxu0 %v6454_v53  ;;  %4306 = vmatprep.subr.bf16.mxu1 %v4305_v32  ;;  %v6478_v22 = vld [vmem:[#allocation18_spill] sm:$0xff] }
  0x9f   : > { %4116 = vmatpush3.bf16.msra.mxu0 %v4113_v7  ;;  %3465 = vmatprep.mubr.f32.mxu0 %v6455_v10  ;;  %v6479_v7 = vld [vmem:[#allocation50_spill] sm:$0xff] }
  0xa0   : > { %3799 = vmatmul.mubr.f32.gmra.mrb[6].mxu1 %v6454_v53  ;;  %4118 = vmatprep.subr.bf16.mxu0 %v4117_v13 }
  0xa1   : > { %4308 = vmatpush3.bf16.msra.mxu1 %v4305_v32  ;;  %3801 = vmatprep.mubr.f32.mxu1 %v6455_v10  ;;  %v6480_v32 = vld [vmem:[#allocation19_spill] sm:$0xff] }
  0xa2   : > { %3466 = vmatmul.mubr.f32.gmra.mrb[8].mxu0 %v5459_v39  ;;  %4310 = vmatprep.subr.bf16.mxu1 %v4309_v21 }
  0xa3   : > { %4120 = vmatpush3.bf16.msra.mxu0 %v4117_v13  ;;  %3468 = vmatprep.mubr.f32.mxu0 %v5496_v26  ;;  %v6481_v13 = vld [vmem:[#allocation52_spill] sm:$0xff] }
  0xa4   : > { %3802 = vmatmul.mubr.f32.gmra.mrb[8].mxu1 %v5459_v39  ;;  %4122 = vmatprep.subr.bf16.mxu0 %v4121_v14 }
  0xa5   : > { %4312 = vmatpush3.bf16.msra.mxu1 %v4309_v21  ;;  %3804 = vmatprep.mubr.f32.mxu1 %v5496_v26  ;;  %v6482_v21 = vld [vmem:[#allocation20_spill] sm:$0xff] }
  0xa6   : > { %3469 = vmatmul.mubr.f32.gmra.mrb[10].mxu0 %v5517_v34  ;;  %4314 = vmatprep.subr.bf16.mxu1 %v4313_v52 }
  0xa7   : > { %4124 = vmatpush3.bf16.msra.mxu0 %v4121_v14  ;;  %3471 = vmatprep.mubr.f32.mxu0 %v5565_v45  ;;  %v6483_v14 = vld [vmem:[#allocation53_spill] sm:$0xff] }
  0xa8   : > { %3805 = vmatmul.mubr.f32.gmra.mrb[10].mxu1 %v5517_v34  ;;  %4126 = vmatprep.subr.bf16.mxu0 %v4125_v11 }
  0xa9   : > { %4316 = vmatpush3.bf16.msra.mxu1 %v4313_v52  ;;  %3807 = vmatprep.mubr.f32.mxu1 %v5565_v45  ;;  %v6484_v52 = vld [vmem:[#allocation22_spill] sm:$0xff] }
  0xaa   : > { %3472 = vmatmul.mubr.f32.gmra.mrb[12].mxu0 %v5571_v42  ;;  %4318 = vmatprep.subr.bf16.mxu1 %v4317_v31 }
  0xab   : > { %4128 = vmatpush3.bf16.msra.mxu0 %v4125_v11  ;;  %3474 = vmatprep.mubr.f32.mxu0 %v5626_v46  ;;  %v6485_v11 = vld [vmem:[#allocation56_spill] sm:$0xff] }
  0xac   : > { %3808 = vmatmul.mubr.f32.gmra.mrb[12].mxu1 %v5571_v42  ;;  %4130 = vmatprep.subr.bf16.mxu0 %v4129_v4 }
  0xad   : > { %4320 = vmatpush3.bf16.msra.mxu1 %v4317_v31  ;;  %3810 = vmatprep.mubr.f32.mxu1 %v5626_v46  ;;  %v6486_v31 = vld [vmem:[#allocation23_spill] sm:$0xff] }
  0xae   : > { %3475 = vmatmul.mubr.f32.gmra.mrb[14].mxu0 %v6456_v36  ;;  %4322 = vmatprep.subr.bf16.mxu1 %v4321_v35 }
  0xaf   : > { %4132 = vmatpush3.bf16.msra.mxu0 %v4129_v4  ;;  %3509 = vmatprep.mubr.f32.mxu0 %v6457_v23  ;;  %v6487_v4 = vld [vmem:[#allocation24_spill] sm:$0xff] }
  0xb0   : > { %3811 = vmatmul.mubr.f32.gmra.mrb[14].mxu1 %v6456_v36  ;;  %4134 = vmatprep.subr.bf16.mxu0 %v6458_v6 }
  0xb1   : > { %4324 = vmatpush3.bf16.msra.mxu1 %v4321_v35  ;;  %3845 = vmatprep.mubr.f32.mxu1 %v6457_v23  ;;  %v6488_v35 = vld [vmem:[#allocation27_spill] sm:$0xff]  ;;  %v6489_v23 = vld [vmem:[#allocation28_spill] sm:$0xff] }
  0xb2   : > { %3510 = vmatmul.mubr.f32.vlgmr.msra.gmra.mrb[0].mxu0 %v6459_v12  ;;  %4326 = vmatprep.subr.bf16.mxu1 %v6460_v33 }
  0xb3   : > { %4136 = vmatpush3.bf16.msra.mxu0 %v6458_v6  ;;  %3512 = vmatprep.mubr.f32.mxu0 %v6461_v57 }
  0xb4   : > { %3846 = vmatmul.mubr.f32.vlgmr.msra.gmra.mrb[0].mxu1 %v6459_v12  ;;  %4138 = vmatprep.subr.bf16.mxu0 %v6462_v37  ;;  %v6490_v12 = vld [vmem:[#allocation31_spill] sm:$0xff] }
  0xb5   : > { %4328 = vmatpush3.bf16.msra.mxu1 %v6460_v33  ;;  %3848 = vmatprep.mubr.f32.mxu1 %v6461_v57  ;;  %v6492_v57 = vld [vmem:[#allocation35_spill] sm:$0xff] }
  0xb6   : > { %3513 = vmatmul.mubr.f32.gmra.mrb[2].mxu0 %v6463_v20  ;;  %4330 = vmatprep.subr.bf16.mxu1 %v6464_v24 }
  0xb7   : > { %4140 = vmatpush3.bf16.msra.mxu0 %v6462_v37  ;;  %3515 = vmatprep.mubr.f32.mxu0 %v6465_v27 }
  0xb8   : > { %3849 = vmatmul.mubr.f32.gmra.mrb[2].mxu1 %v6463_v20  ;;  %4142 = vmatprep.subr.bf16.mxu0 %v6466_v54 }
  0xb9   : > { %4332 = vmatpush3.bf16.msra.mxu1 %v6464_v24  ;;  %3851 = vmatprep.mubr.f32.mxu1 %v6465_v27 }
  0xba   : > { %3516 = vmatmul.mubr.f32.gmra.mrb[4].mxu0 %v6467_v56  ;;  %4334 = vmatprep.subr.bf16.mxu1 %v6468_v61 }
  0xbb   : > { %4144 = vmatpush3.bf16.msra.mxu0 %v6466_v54  ;;  %3518 = vmatprep.mubr.f32.mxu0 %v6469_v49 }
  0xbc   : > { %3852 = vmatmul.mubr.f32.gmra.mrb[4].mxu1 %v6467_v56  ;;  %4146 = vmatprep.subr.bf16.mxu0 %v6470_v8 }
  0xbd   : > { %4336 = vmatpush3.bf16.msra.mxu1 %v6468_v61  ;;  %3854 = vmatprep.mubr.f32.mxu1 %v6469_v49 }
  0xbe   : > { %3519 = vmatmul.mubr.f32.gmra.mrb[6].mxu0 %v6471_v19  ;;  %4338 = vmatprep.subr.bf16.mxu1 %v6472_v55 }
  0xbf   : > { %4148 = vmatpush3.bf16.msra.mxu0 %v6470_v8  ;;  %3521 = vmatprep.mubr.f32.mxu0 %v6473_v58 }
  0xc0   : > { %3855 = vmatmul.mubr.f32.gmra.mrb[6].mxu1 %v6471_v19  ;;  %4150 = vmatprep.subr.bf16.mxu0 %v6474_v43 }
  0xc1   : > { %4340 = vmatpush3.bf16.msra.mxu1 %v6472_v55  ;;  %3857 = vmatprep.mubr.f32.mxu1 %v6473_v58 }
  0xc2   : > { %3522 = vmatmul.mubr.f32.gmra.mrb[8].mxu0 %v6475_v5  ;;  %4342 = vmatprep.subr.bf16.mxu1 %v6476_v51 }
  0xc3   : > { %4152 = vmatpush3.bf16.msra.mxu0 %v6474_v43  ;;  %3524 = vmatprep.mubr.f32.mxu0 %v6477_v9 }
  0xc4   : > { %3858 = vmatmul.mubr.f32.gmra.mrb[8].mxu1 %v6475_v5  ;;  %4154 = vmatprep.subr.bf16.mxu0 %v6478_v22 }
  0xc5   : > { %4344 = vmatpush3.bf16.msra.mxu1 %v6476_v51  ;;  %3860 = vmatprep.mubr.f32.mxu1 %v6477_v9 }
  0xc6   : > { %3525 = vmatmul.mubr.f32.gmra.mrb[10].mxu0 %v6479_v7  ;;  %4346 = vmatprep.subr.bf16.mxu1 %v6480_v32 }
  0xc7   : > { %4156 = vmatpush3.bf16.msra.mxu0 %v6478_v22  ;;  %3527 = vmatprep.mubr.f32.mxu0 %v6481_v13 }
  0xc8   : > { %3861 = vmatmul.mubr.f32.gmra.mrb[10].mxu1 %v6479_v7  ;;  %4158 = vmatprep.subr.bf16.mxu0 %v6482_v21 }
  0xc9   : > { %4348 = vmatpush3.bf16.msra.mxu1 %v6480_v32  ;;  %3863 = vmatprep.mubr.f32.mxu1 %v6481_v13 }
  0xca   : > { %3528 = vmatmul.mubr.f32.gmra.mrb[12].mxu0 %v6483_v14  ;;  %4350 = vmatprep.subr.bf16.mxu1 %v6484_v52 }
  0xcb   : > { %4160 = vmatpush3.bf16.msra.mxu0 %v6482_v21  ;;  %3530 = vmatprep.mubr.f32.mxu0 %v6485_v11 }
  0xcc   : > { %3864 = vmatmul.mubr.f32.gmra.mrb[12].mxu1 %v6483_v14  ;;  %4162 = vmatprep.subr.bf16.mxu0 %v6486_v31 }
  0xcd   : > { %4352 = vmatpush3.bf16.msra.mxu1 %v6484_v52  ;;  %3866 = vmatprep.mubr.f32.mxu1 %v6485_v11 }
  0xce   : > { %3531 = vmatmul.mubr.f32.gmra.mrb[14].mxu0 %v5654_v16  ;;  %4354 = vmatprep.subr.bf16.mxu1 %v6487_v4 }
  0xcf   : > { %4164 = vmatpush3.bf16.msra.mxu0 %v6486_v31  ;;  %3565 = vmatprep.mubr.f32.mxu0 %v6488_v35 }
  0xd0   : > { %3867 = vmatmul.mubr.f32.gmra.mrb[14].mxu1 %v5654_v16  ;;  %4166 = vmatprep.subr.bf16.mxu0 %v5697_v2  ;;  %v6491_v16 = vld [vmem:[#allocation32_spill] sm:$0xff] }
  0xd1   : > { %4356 = vmatpush3.bf16.msra.mxu1 %v6487_v4  ;;  %3901 = vmatprep.mubr.f32.mxu1 %v6488_v35 }
  0xd2   : > { %3566 = vmatmul.mubr.f32.vlgmr.msra.gmra.mrb[0].mxu0 %v6489_v23  ;;  %4358 = vmatprep.subr.bf16.mxu1 %v5703_v47 }
  0xd3   : > { %4168 = vmatpush3.bf16.msra.mxu0 %v5697_v2  ;;  %3568 = vmatprep.mubr.f32.mxu0 %v6490_v12  ;;  %v6493_v2 = vld [vmem:[#allocation37_spill] sm:$0xff] }
  0xd4   : > { %3902 = vmatmul.mubr.f32.vlgmr.msra.gmra.mrb[0].mxu1 %v6489_v23  ;;  %4170 = vmatprep.subr.bf16.mxu0 %v5709_v62 }
  0xd5   : > { %4360 = vmatpush3.bf16.msra.mxu1 %v5703_v47  ;;  %3904 = vmatprep.mubr.f32.mxu1 %v6490_v12  ;;  %v6494_v47 = vld [vmem:[#allocation41_spill] sm:$0xff] }
  0xd6   : > { %3569 = vmatmul.mubr.f32.gmra.mrb[2].mxu0 %v6491_v16  ;;  %4362 = vmatprep.subr.bf16.mxu1 %v5715_v30 }
  0xd7   : > { %4172 = vmatpush3.bf16.msra.mxu0 %v5709_v62  ;;  %3571 = vmatprep.mubr.f32.mxu0 %v6492_v57  ;;  %v6495_v62 = vld [vmem:[#allocation42_spill] sm:$0xff] }
  0xd8   : > { %3905 = vmatmul.mubr.f32.gmra.mrb[2].mxu1 %v6491_v16  ;;  %4174 = vmatprep.subr.bf16.mxu0 %v5721_v59 }
  0xd9   : > { %4364 = vmatpush3.bf16.msra.mxu1 %v5715_v30  ;;  %3907 = vmatprep.mubr.f32.mxu1 %v6492_v57  ;;  %v6496_v30 = vld [vmem:[#allocation45_spill] sm:$0xff] }
  0xda   : > { %3572 = vmatmul.mubr.f32.gmra.mrb[4].mxu0 %v6493_v2  ;;  %4366 = vmatprep.subr.bf16.mxu1 %v5727_v41 }
  0xdb   : > { %4176 = vmatpush3.bf16.msra.mxu0 %v5721_v59  ;;  %3574 = vmatprep.mubr.f32.mxu0 %v6494_v47  ;;  %v6497_v59 = vld [vmem:[#allocation47_spill] sm:$0xff] }
  0xdc   : > { %3908 = vmatmul.mubr.f32.gmra.mrb[4].mxu1 %v6493_v2  ;;  %4178 = vmatprep.subr.bf16.mxu0 %v5734_v44 }
  0xdd   : > { %4368 = vmatpush3.bf16.msra.mxu1 %v5727_v41  ;;  %3910 = vmatprep.mubr.f32.mxu1 %v6494_v47  ;;  %v6498_v41 = vld [vmem:[#allocation49_spill] sm:$0xff] }
  0xde   : > { %3575 = vmatmul.mubr.f32.gmra.mrb[6].mxu0 %v6495_v62  ;;  %4370 = vmatprep.subr.bf16.mxu1 %v5740_v29 }
  0xdf   : > { %4180 = vmatpush3.bf16.msra.mxu0 %v5734_v44  ;;  %3577 = vmatprep.mubr.f32.mxu0 %v6496_v30  ;;  %v6499_v44 = vld [vmem:[#allocation51_spill] sm:$0xff] }
  0xe0   : > { %3911 = vmatmul.mubr.f32.gmra.mrb[6].mxu1 %v6495_v62  ;;  %4182 = vmatprep.subr.bf16.mxu0 %v5746_v15 }
  0xe1   : > { %4372 = vmatpush3.bf16.msra.mxu1 %v5740_v29  ;;  %3913 = vmatprep.mubr.f32.mxu1 %v6496_v30  ;;  %v6500_v29 = vld [vmem:[#allocation54_spill] sm:$0xff] }
  0xe2   : > { %3578 = vmatmul.mubr.f32.gmra.mrb[8].mxu0 %v6497_v59  ;;  %4374 = vmatprep.subr.bf16.mxu1 %v5753_v28 }
  0xe3   : > { %4184 = vmatpush3.bf16.msra.mxu0 %v5746_v15  ;;  %3580 = vmatprep.mubr.f32.mxu0 %v6498_v41  ;;  %v6501_v15 = vld [vmem:[#allocation55_spill] sm:$0xff] }
  0xe4   : > { %3914 = vmatmul.mubr.f32.gmra.mrb[8].mxu1 %v6497_v59  ;;  %4186 = vmatprep.subr.bf16.mxu0 %v5759_v3 }
  0xe5   : > { %4376 = vmatpush3.bf16.msra.mxu1 %v5753_v28  ;;  %3916 = vmatprep.mubr.f32.mxu1 %v6498_v41  ;;  %v6502_v28 = vld [vmem:[#allocation58_spill] sm:$0xff] }
  0xe6   : > { %3581 = vmatmul.mubr.f32.gmra.mrb[10].mxu0 %v6499_v44  ;;  %4378 = vmatprep.subr.bf16.mxu1 %v5765_v50 }
  0xe7   : > { %4188 = vmatpush3.bf16.msra.mxu0 %v5759_v3  ;;  %3583 = vmatprep.mubr.f32.mxu0 %v6500_v29  ;;  %v6503_v3 = vld [vmem:[#allocation59_spill] sm:$0xff] }
  0xe8   : > { %3917 = vmatmul.mubr.f32.gmra.mrb[10].mxu1 %v6499_v44  ;;  %4190 = vmatprep.subr.bf16.mxu0 %v5772_v48 }
  0xe9   : > { %4380 = vmatpush3.bf16.msra.mxu1 %v5765_v50  ;;  %3919 = vmatprep.mubr.f32.mxu1 %v6500_v29  ;;  %v6504_v50 = vld [vmem:[#allocation21_spill] sm:$0xff] }
  0xea   : > { %3584 = vmatmul.mubr.f32.gmra.mrb[12].mxu0 %v6501_v15  ;;  %4382 = vmatprep.subr.bf16.mxu1 %v5778_v60 }
  0xeb   : > { %4192 = vmatpush3.bf16.msra.mxu0 %v5772_v48  ;;  %3586 = vmatprep.mubr.f32.mxu0 %v6502_v28 }
  0xec   : > { %3920 = vmatmul.mubr.f32.gmra.mrb[12].mxu1 %v6501_v15  ;;  %4194 = vmatprep.subr.bf16.mxu0 %v5780_v0 }
  0xed   : > { %4384 = vmatpush3.bf16.msra.mxu1 %v5778_v60  ;;  %3922 = vmatprep.mubr.f32.mxu1 %v6502_v28 }
  0xee   : > { %3587 = vmatmul.mubr.f32.gmra.mrb[14].mxu0 %v6503_v3  ;;  %4386 = vmatprep.subr.bf16.mxu1 %v5783_v40 }
  0xef   : > { %4196 = vmatpush3.bf16.msra.mxu0 %v5780_v0  ;;  %3621 = vmatprep.mubr.f32.mxu0 %v6504_v50 }
  0xf0   : > { %3923 = vmatmul.mubr.f32.gmra.mrb[14].mxu1 %v6503_v3  ;;  %4198 = vmatprep.subr.bf16.mxu0 %v6458_v6 }
  0xf1   : > { %4388 = vmatpush3.bf16.msra.mxu1 %v5783_v40  ;;  %3957 = vmatprep.mubr.f32.mxu1 %v6504_v50 }
  0xf2   : > { %3622 = vmatmul.mubr.f32.vlgmr.msra.gmra.mrb[0].mxu0 %v5166_v38  ;;  %4390 = vmatprep.subr.bf16.mxu1 %v6460_v33 }
  0xf3   : > { %4200 = vmatpush3.bf16.msra.mxu0 %v6458_v6  ;;  %3624 = vmatprep.mubr.f32.mxu0 %v5205_v1 }
  0xf4   : > { %3958 = vmatmul.mubr.f32.vlgmr.msra.gmra.mrb[0].mxu1 %v5166_v38  ;;  %4202 = vmatprep.subr.bf16.mxu0 %v6462_v37 }
  0xf5   : > { %4392 = vmatpush3.bf16.msra.mxu1 %v6460_v33  ;;  %3960 = vmatprep.mubr.f32.mxu1 %v5205_v1 }
  0xf6   : > { %3625 = vmatmul.mubr.f32.gmra.mrb[2].mxu0 %v5213_v25  ;;  %4394 = vmatprep.subr.bf16.mxu1 %v6464_v24 }
  0xf7   : > { %4204 = vmatpush3.bf16.msra.mxu0 %v6462_v37  ;;  %3627 = vmatprep.mubr.f32.mxu0 %v5271_v17 }
  0xf8   : > { %3961 = vmatmul.mubr.f32.gmra.mrb[2].mxu1 %v5213_v25  ;;  %4206 = vmatprep.subr.bf16.mxu0 %v6466_v54 }
  0xf9   : > { %4396 = vmatpush3.bf16.msra.mxu1 %v6464_v24  ;;  %3963 = vmatprep.mubr.f32.mxu1 %v5271_v17 }
  0xfa   : > { %3628 = vmatmul.mubr.f32.gmra.mrb[4].mxu0 %v6453_v63  ;;  %4398 = vmatprep.subr.bf16.mxu1 %v6468_v61 }
  0xfb   : > { %4208 = vmatpush3.bf16.msra.mxu0 %v6466_v54  ;;  %3630 = vmatprep.mubr.f32.mxu0 %v5370_v18 }
  0xfc   : > { %3964 = vmatmul.mubr.f32.gmra.mrb[4].mxu1 %v6453_v63  ;;  %4210 = vmatprep.subr.bf16.mxu0 %v6470_v8 }
  0xfd   : > { %4400 = vmatpush3.bf16.msra.mxu1 %v6468_v61  ;;  %3966 = vmatprep.mubr.f32.mxu1 %v5370_v18 }
  0xfe   : > { %3631 = vmatmul.mubr.f32.gmra.mrb[6].mxu0 %v6454_v53  ;;  %4402 = vmatprep.subr.bf16.mxu1 %v6472_v55 }
  0xff   : > { %4212 = vmatpush3.bf16.msra.mxu0 %v6470_v8  ;;  %3633 = vmatprep.mubr.f32.mxu0 %v6455_v10 }
 0x100   : > { %3967 = vmatmul.mubr.f32.gmra.mrb[6].mxu1 %v6454_v53  ;;  %4214 = vmatprep.subr.bf16.mxu0 %v6474_v43 }
 0x101   : > { %4404 = vmatpush3.bf16.msra.mxu1 %v6472_v55  ;;  %3969 = vmatprep.mubr.f32.mxu1 %v6455_v10 }
 0x102   : > { %3634 = vmatmul.mubr.f32.gmra.mrb[8].mxu0 %v5459_v39  ;;  %4406 = vmatprep.subr.bf16.mxu1 %v6476_v51 }
 0x103   : > { %4216 = vmatpush3.bf16.msra.mxu0 %v6474_v43  ;;  %3636 = vmatprep.mubr.f32.mxu0 %v5496_v26 }
 0x104   : > { %3970 = vmatmul.mubr.f32.gmra.mrb[8].mxu1 %v5459_v39  ;;  %4218 = vmatprep.subr.bf16.mxu0 %v6478_v22 }
 0x105   : > { %4408 = vmatpush3.bf16.msra.mxu1 %v6476_v51  ;;  %3972 = vmatprep.mubr.f32.mxu1 %v5496_v26 }
 0x106   : > { %3637 = vmatmul.mubr.f32.gmra.mrb[10].mxu0 %v5517_v34  ;;  %4410 = vmatprep.subr.bf16.mxu1 %v6480_v32 }
 0x107   : > { %4220 = vmatpush3.bf16.msra.mxu0 %v6478_v22  ;;  %3639 = vmatprep.mubr.f32.mxu0 %v5565_v45 }
 0x108   : > { %3973 = vmatmul.mubr.f32.gmra.mrb[10].mxu1 %v5517_v34  ;;  %4222 = vmatprep.subr.bf16.mxu0 %v6482_v21 }
 0x109   : > { %4412 = vmatpush3.bf16.msra.mxu1 %v6480_v32  ;;  %3975 = vmatprep.mubr.f32.mxu1 %v5565_v45 }
 0x10a   : > { %3640 = vmatmul.mubr.f32.gmra.mrb[12].mxu0 %v5571_v42  ;;  %4414 = vmatprep.subr.bf16.mxu1 %v6484_v52 }
 0x10b   : > { %4224 = vmatpush3.bf16.msra.mxu0 %v6482_v21  ;;  %3642 = vmatprep.mubr.f32.mxu0 %v5626_v46 }
 0x10c   : > { %3976 = vmatmul.mubr.f32.gmra.mrb[12].mxu1 %v5571_v42  ;;  %4226 = vmatprep.subr.bf16.mxu0 %v6486_v31 }
 0x10d   : > { %4416 = vmatpush3.bf16.msra.mxu1 %v6484_v52  ;;  %3978 = vmatprep.mubr.f32.mxu1 %v5626_v46 }
 0x10e   : > { %3643 = vmatmul.mubr.f32.gmra.mrb[14].mxu0 %v6456_v36  ;;  %4418 = vmatprep.subr.bf16.mxu1 %v6487_v4 }
 0x10f   : > { %4228 = vmatpush3.bf16.msra.mxu0 %v6486_v31  ;;  %3677 = vmatprep.mubr.f32.mxu0 %v6504_v50 }
 0x110   : > { %3979 = vmatmul.mubr.f32.gmra.mrb[14].mxu1 %v6456_v36 }
 0x111   : > { %4420 = vmatpush3.bf16.msra.mxu1 %v6487_v4  ;;  %4013 = vmatprep.mubr.f32.mxu1 %v6504_v50 }
 0x112   : > { %3678 = vmatmul.mubr.f32.vlgmr.msra.gmra.mrb[0].mxu0 %v5166_v38 }
 0x113   : > { %3680 = vmatprep.mubr.f32.mxu0 %v5205_v1 }
 0x114   : > { %4014 = vmatmul.mubr.f32.vlgmr.msra.gmra.mrb[0].mxu1 %v5166_v38 }
 0x115   : > { %4016 = vmatprep.mubr.f32.mxu1 %v5205_v1 }
 0x116   : > { %3681 = vmatmul.mubr.f32.gmra.mrb[2].mxu0 %v5213_v25 }
 0x117   : > { %3683 = vmatprep.mubr.f32.mxu0 %v5271_v17 }
 0x118   : > { %4017 = vmatmul.mubr.f32.gmra.mrb[2].mxu1 %v5213_v25 }
 0x119   : > { %4019 = vmatprep.mubr.f32.mxu1 %v5271_v17 }
 0x11a   : > { %3684 = vmatmul.mubr.f32.gmra.mrb[4].mxu0 %v6453_v63 }
 0x11b   : > { %3686 = vmatprep.mubr.f32.mxu0 %v5370_v18 }
 0x11c   : > { %4020 = vmatmul.mubr.f32.gmra.mrb[4].mxu1 %v6453_v63 }
 0x11d   : > { %4022 = vmatprep.mubr.f32.mxu1 %v5370_v18 }
 0x11e   : > { %3687 = vmatmul.mubr.f32.gmra.mrb[6].mxu0 %v6454_v53 }
 0x11f   : > { %3689 = vmatprep.mubr.f32.mxu0 %v6455_v10 }
 0x120   : > { %4023 = vmatmul.mubr.f32.gmra.mrb[6].mxu1 %v6454_v53 }
 0x121   : > { %4025 = vmatprep.mubr.f32.mxu1 %v6455_v10 }
 0x122   : > { %3690 = vmatmul.mubr.f32.gmra.mrb[8].mxu0 %v5459_v39 }
 0x123   : > { %3692 = vmatprep.mubr.f32.mxu0 %v5496_v26 }
 0x124   : > { %4026 = vmatmul.mubr.f32.gmra.mrb[8].mxu1 %v5459_v39 }
 0x125   : > { %4028 = vmatprep.mubr.f32.mxu1 %v5496_v26 }
 0x126   : > { %3693 = vmatmul.mubr.f32.gmra.mrb[10].mxu0 %v5517_v34 }
 0x127   : > { %3695 = vmatprep.mubr.f32.mxu0 %v5565_v45 }
 0x128   : > { %4029 = vmatmul.mubr.f32.gmra.mrb[10].mxu1 %v5517_v34 }
 0x129   : > { %4031 = vmatprep.mubr.f32.mxu1 %v5565_v45 }
 0x12a   : > { %3696 = vmatmul.mubr.f32.gmra.mrb[12].mxu0 %v5571_v42 }
 0x12b   : > { %3698 = vmatprep.mubr.f32.mxu0 %v5626_v46 }
 0x12c   : > { %4032 = vmatmul.mubr.f32.gmra.mrb[12].mxu1 %v5571_v42 }
 0x12d   : > { %4034 = vmatprep.mubr.f32.mxu1 %v5626_v46 }
 0x12e   : > { %3699 = vmatmul.mubr.f32.gmra.mrb[14].mxu0 %v6456_v36 }
 0x130   : > { %4035 = vmatmul.mubr.f32.gmra.mrb[14].mxu1 %v6456_v36 }
 0x1e5   : > { %v3679_v38 = vpop.f32.mrb[0].mxu0 }
 0x1e6   : > { %2812 = vst [vmem:[%s6058_s4 + $0x20] sm:$0xff] %v3679_v38  ;;  %2844 = vst [vmem:[%s6058_s4 + $0x30] sm:$0xff] %v3679_v38  ;;  %v1415_v1 = vpop.f32.mrb[1].mxu0 }
 0x1e7   : > { %2860 = vst [vmem:[%s6058_s4 + $0x38] sm:$0xff] %v3679_v38  ;;  %v4015_v25 = vpop.f32.mrb[0].mxu1  ;;  %2811 = vst [vmem:[%s6058_s4] sm:$0xff] %v1415_v1 }
 0x1e8   : > { %2843 = vst [vmem:[%s6058_s4 + $0x10] sm:$0xff] %v1415_v1  ;;  %2859 = vst [vmem:[%s6058_s4 + $0x18] sm:$0xff] %v1415_v1  ;;  %v2717_v17 = vpop.f32.mrb[1].mxu1 }
 0x1e9   : > { %2828 = vst [vmem:[%s6058_s4 + $0x28] sm:$0xff] %v4015_v25  ;;  %2827 = vst [vmem:[%s6058_s4 + $0x8] sm:$0xff] %v2717_v17  ;;  %v3682_v18 = vpop.f32.mrb[2].mxu0 }
 0x1ea   : > { %2814 = vst [vmem:[%s6058_s4 + $0x60] sm:$0xff] %v3682_v18  ;;  %2846 = vst [vmem:[%s6058_s4 + $0x70] sm:$0xff] %v3682_v18  ;;  %v1427_v39 = vpop.f32.mrb[3].mxu0 }
 0x1eb   : > { %2862 = vst [vmem:[%s6058_s4 + $0x78] sm:$0xff] %v3682_v18  ;;  %v4018_v26 = vpop.f32.mrb[2].mxu1  ;;  %2813 = vst [vmem:[%s6058_s4 + $0x40] sm:$0xff] %v1427_v39 }
 0x1ec   : > { %2845 = vst [vmem:[%s6058_s4 + $0x50] sm:$0xff] %v1427_v39  ;;  %2861 = vst [vmem:[%s6058_s4 + $0x58] sm:$0xff] %v1427_v39  ;;  %v2729_v34 = vpop.f32.mrb[3].mxu1 }
 0x1ed   : > { %2830 = vst [vmem:[%s6058_s4 + $0x68] sm:$0xff] %v4018_v26  ;;  %2829 = vst [vmem:[%s6058_s4 + $0x48] sm:$0xff] %v2729_v34  ;;  %v3685_v45 = vpop.f32.mrb[4].mxu0 }
 0x1ee   : > { %2816 = vst [vmem:[%s6058_s4 + $0xa0] sm:$0xff] %v3685_v45  ;;  %2848 = vst [vmem:[%s6058_s4 + $0xb0] sm:$0xff] %v3685_v45  ;;  %v1439_v42 = vpop.f32.mrb[5].mxu0 }
 0x1ef   : > { %2864 = vst [vmem:[%s6058_s4 + $0xb8] sm:$0xff] %v3685_v45  ;;  %v4021_v46 = vpop.f32.mrb[4].mxu1  ;;  %2815 = vst [vmem:[%s6058_s4 + $0x80] sm:$0xff] %v1439_v42 }
 0x1f0   : > { %2847 = vst [vmem:[%s6058_s4 + $0x90] sm:$0xff] %v1439_v42  ;;  %2863 = vst [vmem:[%s6058_s4 + $0x98] sm:$0xff] %v1439_v42  ;;  %v2741_v48 = vpop.f32.mrb[5].mxu1 }
 0x1f1   : > { %2832 = vst [vmem:[%s6058_s4 + $0xa8] sm:$0xff] %v4021_v46  ;;  %2831 = vst [vmem:[%s6058_s4 + $0x88] sm:$0xff] %v2741_v48  ;;  %v3688_v60 = vpop.f32.mrb[6].mxu0 }
 0x1f2   : > { %2818 = vst [vmem:[%s6058_s4 + $0xe0] sm:$0xff] %v3688_v60  ;;  %2850 = vst [vmem:[%s6058_s4 + $0xf0] sm:$0xff] %v3688_v60  ;;  %v1451_v0 = vpop.f32.mrb[7].mxu0 }
 0x1f3   : > { %2866 = vst [vmem:[%s6058_s4 + $0xf8] sm:$0xff] %v3688_v60  ;;  %v4024_v40 = vpop.f32.mrb[6].mxu1  ;;  %2817 = vst [vmem:[%s6058_s4 + $0xc0] sm:$0xff] %v1451_v0 }
 0x1f4   : > { %2849 = vst [vmem:[%s6058_s4 + $0xd0] sm:$0xff] %v1451_v0  ;;  %2865 = vst [vmem:[%s6058_s4 + $0xd8] sm:$0xff] %v1451_v0  ;;  %v2753_v63 = vpop.f32.mrb[7].mxu1 }
 0x1f5   : > { %2834 = vst [vmem:[%s6058_s4 + $0xe8] sm:$0xff] %v4024_v40  ;;  %2833 = vst [vmem:[%s6058_s4 + $0xc8] sm:$0xff] %v2753_v63  ;;  %v3691_v53 = vpop.f32.mrb[8].mxu0 }
 0x1f6   : > { %2820 = vst [vmem:[%s6058_s4 + $0x120] sm:$0xff] %v3691_v53  ;;  %2852 = vst [vmem:[%s6058_s4 + $0x130] sm:$0xff] %v3691_v53  ;;  %v1463_v10 = vpop.f32.mrb[9].mxu0 }
 0x1f7   : > { %2868 = vst [vmem:[%s6058_s4 + $0x138] sm:$0xff] %v3691_v53  ;;  %v4027_v36 = vpop.f32.mrb[8].mxu1  ;;  %2819 = vst [vmem:[%s6058_s4 + $0x100] sm:$0xff] %v1463_v10 }
 0x1f8   : > { %2851 = vst [vmem:[%s6058_s4 + $0x110] sm:$0xff] %v1463_v10  ;;  %2867 = vst [vmem:[%s6058_s4 + $0x118] sm:$0xff] %v1463_v10  ;;  %v2765_v6 = vpop.f32.mrb[9].mxu1 }
 0x1f9   : > { %2836 = vst [vmem:[%s6058_s4 + $0x128] sm:$0xff] %v4027_v36  ;;  %2835 = vst [vmem:[%s6058_s4 + $0x108] sm:$0xff] %v2765_v6  ;;  %v3694_v33 = vpop.f32.mrb[10].mxu0 }
 0x1fa   : > { %2822 = vst [vmem:[%s6058_s4 + $0x160] sm:$0xff] %v3694_v33  ;;  %2854 = vst [vmem:[%s6058_s4 + $0x170] sm:$0xff] %v3694_v33  ;;  %v1475_v37 = vpop.f32.mrb[11].mxu0 }
 0x1fb   : > { %2870 = vst [vmem:[%s6058_s4 + $0x178] sm:$0xff] %v3694_v33  ;;  %v4030_v20 = vpop.f32.mrb[10].mxu1  ;;  %2821 = vst [vmem:[%s6058_s4 + $0x140] sm:$0xff] %v1475_v37 }
 0x1fc   : > { %2853 = vst [vmem:[%s6058_s4 + $0x150] sm:$0xff] %v1475_v37  ;;  %2869 = vst [vmem:[%s6058_s4 + $0x158] sm:$0xff] %v1475_v37  ;;  %v2777_v24 = vpop.f32.mrb[11].mxu1 }
 0x1fd   : > { %2838 = vst [vmem:[%s6058_s4 + $0x168] sm:$0xff] %v4030_v20  ;;  %2837 = vst [vmem:[%s6058_s4 + $0x148] sm:$0xff] %v2777_v24  ;;  %v3697_v27 = vpop.f32.mrb[12].mxu0 }
 0x1fe   : > { %2824 = vst [vmem:[%s6058_s4 + $0x1a0] sm:$0xff] %v3697_v27  ;;  %2856 = vst [vmem:[%s6058_s4 + $0x1b0] sm:$0xff] %v3697_v27  ;;  %v1487_v54 = vpop.f32.mrb[13].mxu0 }
 0x1ff   : > { %2872 = vst [vmem:[%s6058_s4 + $0x1b8] sm:$0xff] %v3697_v27  ;;  %v4033_v56 = vpop.f32.mrb[12].mxu1  ;;  %2823 = vst [vmem:[%s6058_s4 + $0x180] sm:$0xff] %v1487_v54 }
 0x200   : > { %2855 = vst [vmem:[%s6058_s4 + $0x190] sm:$0xff] %v1487_v54  ;;  %2871 = vst [vmem:[%s6058_s4 + $0x198] sm:$0xff] %v1487_v54  ;;  %v2789_v61 = vpop.f32.mrb[13].mxu1 }
 0x201   : > { %2840 = vst [vmem:[%s6058_s4 + $0x1a8] sm:$0xff] %v4033_v56  ;;  %2839 = vst [vmem:[%s6058_s4 + $0x188] sm:$0xff] %v2789_v61  ;;  %v3700_v49 = vpop.f32.mrb[14].mxu0 }
 0x202   : > { %2826 = vst [vmem:[%s6058_s4 + $0x1e0] sm:$0xff] %v3700_v49  ;;  %2858 = vst [vmem:[%s6058_s4 + $0x1f0] sm:$0xff] %v3700_v49  ;;  %v1499_v8 = vpop.f32.mrb[15].mxu0 }
 0x203   : > { %2874 = vst [vmem:[%s6058_s4 + $0x1f8] sm:$0xff] %v3700_v49  ;;  %v4036_v19 = vpop.f32.mrb[14].mxu1  ;;  %2825 = vst [vmem:[%s6058_s4 + $0x1c0] sm:$0xff] %v1499_v8 }
 0x204   : > { %2857 = vst [vmem:[%s6058_s4 + $0x1d0] sm:$0xff] %v1499_v8  ;;  %2873 = vst [vmem:[%s6058_s4 + $0x1d8] sm:$0xff] %v1499_v8  ;;  %v2801_v55 = vpop.f32.mrb[15].mxu1 }
 0x205   : > { %2842 = vst [vmem:[%s6058_s4 + $0x1e8] sm:$0xff] %v4036_v19  ;;  %2841 = vst [vmem:[%s6058_s4 + $0x1c8] sm:$0xff] %v2801_v55 }
 0x206   : > { %4674 = shalt.err (!%p4671_p2)
}
 0x207   : > { %s4675_s27 = scalar_lea.hbm %s6124_s19, 8192  ;;  %s4679_s30 = scalar_lea.hbm %s6178_s3, 16384 }
 0x208   : > { %p4676_p4 = scmp.ne.s32.totalorder %s6124_s19, %s4675_s27  ;;  %p4680_p9 = scmp.lt.u32.totalorder %s6124_s19, %s6178_s3 }
 0x209   : > { %p4681_p1 = scmp.lt.u32.totalorder %s4679_s30, %s4675_s27  ;;  %p4683_p6 = scmp.lt.u32.totalorder %s4675_s27, %s6124_s19 }
 0x20a   : > { %p4677_p5 = pnand %p4676_p4, %p6505_p11 }
 0x20b   : > { %p4682_p3 = por %p4681_p1, %p4680_p9 }
 0x20c   : > { %p4678_p7 = pneg %p4677_p5 }
 0x20d   : > { %p4684_p12 = por %p4683_p6, %p4682_p3 }
 0x20f   : > { %p4685_p13 = pnand %p4684_p12, %p4678_p7 }
 0x211   : > { %4688 = shalt.err (!%p4685_p13)
}
 0x212   : > { %s4733_s11 = smov 512   ;;  %s4734_s4 = smov 32  }
 0x213   : > { %4583 = dma.vmem_to_hbm [thread:$0]  (%p6505_p11), %s6126_s7, 8192, %s6124_s19, %s2876_s16, %s4733_s11, %s4733_s11, %s4734_s4  }
 0x214 PF: > { %s2905_s6 = sand.u32 1, %s4715_s12   ;;  %p6506_p8 = scmp.ne.s32.totalorder %s6334_s25, 0 }
 0x215   : > { %p6507_p10 = scmp.ge.s32.totalorder %s4727_s15, 2  ;;  %s2906_s8 = scalar_lea.sflag [#allocation4], %s2905_s6 }
 0x217   : > { %p4590_p0 = pnand %p6507_p10, %p6506_p8 }
 0x219   : > { %4710 = dma.done.wait (!%p4590_p0), %s2906_s8, 8192  }
 0x21a   : > { %4712 = vsyncadd (!%p4590_p0), %s2906_s8, 4294959104  ;;  %p16_p2 = scmp.ge.s32.totalorder %s4780_s18, 4   ;;  %s6508_s12 = smov %s4719_s13 }
 0x21b   : > { %s6509_s13 = smov %s4723_s14  ;;  %s6510_s14 = smov %s4792_s21 }
 0x21c   : > { %s6511_s15 = smov %s4780_s18  ;;  %18 = sbr.rel (!%p16_p2) target bundleno = 5 (0x5), region = 77 }
 0x223   :  { %2911 = vsyncpa [#allocation3], 1 }
 0x224   :  { %2913 = vsyncpa [#allocation3 + $0x1], 1 }
 0x225   :  { %2914 = vsyncpa [#allocation4], 1 }
 0x226   :  { %2916 = vsyncpa [#allocation4 + $0x1], 1 }

// kernel: cat_mm.2
= control target key start
LH: loop header
LB: loop body
LE: loop exit
PB: predicated region body
PF: predicated region fallthrough
CT: control target
= control target key end

     0   :  { %8 = vsyncpa [#allocation3], 0  ;;  %s4280_s9 = smov [#allocation2]   ;;  %s5226_s0 = inlined_call_operand.hbm [shape: f32[128,128], index: 0, kind: input, shape index: {}]   ;;  %s5227_s1 = inlined_call_operand.vmem [shape: f32[128,128], index: 1, kind: output, shape index: {0}]   ;;  %s5228_s2 = inlined_call_operand.vmem [shape: f32[128,128], index: 2, kind: output, shape index: {1}]  }
   0x1   :  { %s14_s10 = sshll.u32 %s4280_s9, 4  ;;  %s4256_s13 = scalar_lea.hbm %s5226_s0, 2048  ;;  %s15_s10 = int_to_ptr.vmem [resolvable:$true] %s14_s10 }
   0x2   :  { %p4257_p0 = scmp.ne.s32.totalorder %s5226_s0, %s4256_s13  ;;  %p4260_p1 = scmp.lt.u32.totalorder %s4256_s13, %s5226_s0 }
   0x4   :  { %p4262_p2 = pnand %p4260_p1, %p4257_p0 }
   0x6   :  { %4265 = shalt.err (!%p4262_p2)
}
   0x7   :  { %s4266_s18 = scalar_lea.vmem %s15_s10, 2048  ;;  %p4271_p4 = scmp.lt.s32.totalorder %s15_s10, %s15_s10 }
   0x8   :  { %p4267_p3 = scmp.ne.s32.totalorder %s15_s10, %s4266_s18  ;;  %p4272_p5 = scmp.lt.s32.totalorder %s4266_s18, %s4266_s18 }
   0xa   :  { %p4273_p6 = por %p4272_p5, %p4271_p4 }
   0xc   :  { %p4274_p7 = pnand %p4273_p6, %p4267_p3 }
   0xe   :  { %4277 = shalt.err (!%p4274_p7)
}
   0xf   :  { %s4281_s19 = smov 128   ;;  %s4282_s20 = smov 8  }
  0x10   :  { %20 = dma.hbm_to_vmem [thread:$0]  %s5226_s0, 2048, %s15_s10, [#allocation3], %s4281_s19, %s4281_s19, %s4282_s20  }
  0x11   :  { %4278 = dma.done.wait [#allocation3], 2048  }
  0x12   :  { %4279 = vsyncadd [#allocation3], 4294965248  ;;  %v24_v0 = vld [vmem:[#allocation2] sm:$0xff]  ;;  %v25_v1 = vld [vmem:[#allocation2 + $0x8] sm:$0xff] }
  0x13   :  { %v26_v2 = vld [vmem:[#allocation2 + $0x10] sm:$0xff]  ;;  %v4310_v3 = vand.u32 4294901760, %v24_v0  ;;  %v4312_v4 = vand.u32 4294901760, %v25_v1  ;;  %v27_v5 = vld [vmem:[#allocation2 + $0x18] sm:$0xff]  ;;  %v28_v7 = vld [vmem:[#allocation2 + $0x20] sm:$0xff] }
  0x14   :  { %v4314_v6 = vand.u32 4294901760, %v26_v2  ;;  %v4316_v8 = vld [vmem:[#allocation2 + $0x28] sm:$0xff]  ;;  %v4318_v9 = vand.u32 4294901760, %v27_v5  ;;  %v4324_v11 = vand.u32 4294901760, %v28_v7  ;;  %v30_v14 = vld [vmem:[#allocation2 + $0x30] sm:$0xff]  ;;  %v31_v15 = vld [vmem:[#allocation2 + $0x38] sm:$0xff] }
  0x15   :  { %v4322_v10 = vpack.c.bf16 %v4312_v4, %v4310_v3  ;;  %v4327_v12 = vand.u32 4294901760, %v4316_v8  ;;  %v4337_v16 = vsub.f32 %v24_v0, %v4310_v3  ;;  %v4345_v18 = vand.u32 4294901760, %v30_v14  ;;  %v4349_v20 = vld [vmem:[#allocation2 + $0x40] sm:$0xff]  ;;  %v4351_v21 = vld [vmem:[#allocation2 + $0x48] sm:$0xff]  ;;  %v4373_v27 = vld [vmem:[#allocation2 + $0x50] sm:$0xff] }
  0x16   :  { %v4331_v13 = vpack.c.bf16 %v4318_v9, %v4314_v6  ;;  %v4347_v19 = vand.u32 4294901760, %v31_v15  ;;  %v4367_v25 = vand.u32 4294901760, %v4349_v20  ;;  %v4370_v26 = vand.u32 4294901760, %v4351_v21  ;;  %v4375_v28 = vld [vmem:[#allocation2 + $0x58] sm:$0xff]  ;;  %v4389_v33 = vld [vmem:[#allocation2 + $0x60] sm:$0xff]  ;;  %v4395_v35 = vld [vmem:[#allocation2 + $0x68] sm:$0xff] }
  0x17   :  { %3710 = vmatprep.subr.bf16.mxu0 %v4322_v10  ;;  %3902 = vmatprep.subr.bf16.mxu1 %v4322_v10  ;;  %v4343_v17 = vpack.c.bf16 %v4327_v12, %v4324_v11  ;;  %v4354_v22 = vand.u32 4294901760, %v4337_v16  ;;  %v4384_v31 = vand.u32 4294901760, %v4373_v27  ;;  %v4387_v32 = vand.u32 4294901760, %v4375_v28  ;;  %v4413_v40 = vld [vmem:[#allocation2 + $0x70] sm:$0xff]  ;;  %v4415_v41 = vld [vmem:[#allocation2 + $0x78] sm:$0xff] }
  0x18   :  { %3712 = vmatpush3.bf16.msra.mxu0 %v4322_v10  ;;  %3904 = vmatpush3.bf16.msra.mxu1 %v4322_v10  ;;  %v4364_v24 = vpack.c.bf16 %v4347_v19, %v4345_v18  ;;  %v4381_v30 = vpack.c.bf16 %v4370_v26, %v4367_v25  ;;  %v4392_v34 = vsub.f32 %v25_v1, %v4312_v4  ;;  %v4400_v36 = vand.u32 4294901760, %v4389_v33 }
  0x19   :  { %3714 = vmatprep.subr.bf16.mxu0 %v4331_v13  ;;  %3906 = vmatprep.subr.bf16.mxu1 %v4331_v13  ;;  %v124_v23 = vsub.f32 %v4337_v16, %v4354_v22  ;;  %v4403_v37 = vsub.f32 %v26_v2, %v4314_v6  ;;  %v4408_v38 = vpack.c.bf16 %v4387_v32, %v4384_v31  ;;  %v4411_v39 = vand.u32 4294901760, %v4395_v35 }
  0x1a   :  { %v4418_v42 = vand.u32 4294901760, %v4392_v34  ;;  %v4421_v43 = vsub.f32 %v27_v5, %v4318_v9  ;;  %v4427_v44 = vand.u32 4294901760, %v4413_v40  ;;  %v4430_v45 = vand.u32 4294901760, %v4415_v41 }
  0x1b   :  { %v125_v29 = vand.u32 4294901760, %v124_v23  ;;  %v4433_v46 = vand.u32 4294901760, %v4403_v37  ;;  %v4436_v47 = vsub.f32 %v28_v7, %v4324_v11  ;;  %v4441_v48 = vpack.c.bf16 %v4411_v39, %v4400_v36 }
  0x1c   :  { %3716 = vmatpush3.bf16.msra.mxu0 %v4331_v13  ;;  %3908 = vmatpush3.bf16.msra.mxu1 %v4331_v13  ;;  %v134_v49 = vsub.f32 %v4392_v34, %v4418_v42  ;;  %v4446_v50 = vand.u32 4294901760, %v4421_v43  ;;  %v4450_v51 = vsub.f32 %v4316_v8, %v4327_v12  ;;  %v4455_v52 = vsub.f32 %v30_v14, %v4345_v18 }
  0x1d   :  { %3718 = vmatprep.subr.bf16.mxu0 %v4343_v17  ;;  %3910 = vmatprep.subr.bf16.mxu1 %v4343_v17  ;;  %v4458_v53 = vsub.f32 %v31_v15, %v4347_v19  ;;  %v144_v54 = vsub.f32 %v4403_v37, %v4433_v46  ;;  %v4464_v55 = vand.u32 4294901760, %v4436_v47  ;;  %v4469_v56 = vpack.c.bf16 %v4430_v45, %v4427_v44 }
  0x1e   :  { %3069 = vmatprep.mubr.f32.mxu0 %v125_v29  ;;  %v135_v57 = vand.u32 4294901760, %v134_v49  ;;  %v154_v58 = vsub.f32 %v4421_v43, %v4446_v50  ;;  %v4474_v59 = vand.u32 4294901760, %v4450_v51  ;;  %v4478_v60 = vand.u32 4294901760, %v4455_v52 }
  0x1f   :  { %v4481_v61 = vand.u32 4294901760, %v4458_v53  ;;  %v145_v62 = vand.u32 4294901760, %v144_v54  ;;  %v164_v63 = vsub.f32 %v4436_v47, %v4464_v55  ;;  %v4489_v0 = vsub.f32 %v4349_v20, %v4367_v25 }
  0x20   :  { %3720 = vmatpush3.bf16.msra.mxu0 %v4343_v17  ;;  %3912 = vmatpush3.bf16.msra.mxu1 %v4343_v17  ;;  %v4492_v1 = vpack.c.bf16 %v135_v57, %v125_v29  ;;  %v155_v2 = vand.u32 4294901760, %v154_v58  ;;  %v174_v5 = vsub.f32 %v4450_v51, %v4474_v59  ;;  %v4498_v7 = vsub.f32 %v4351_v21, %v4370_v26 }
  0x21   :  { %3722 = vmatprep.subr.bf16.mxu0 %v4364_v24  ;;  %3914 = vmatprep.subr.bf16.mxu1 %v4364_v24  ;;  %5271 = vst [vmem:[#allocation5_spill] sm:$0xff] %v4481_v61  ;;  %v184_v8 = vsub.f32 %v4455_v52, %v4478_v60  ;;  %v194_v14 = vsub.f32 %v4458_v53, %v4481_v61  ;;  %v165_v15 = vand.u32 4294901760, %v164_v63  ;;  %v4508_v20 = vand.u32 4294901760, %v4489_v0 }
  0x22   :  { %5272 = vst [vmem:[#allocation6_spill] sm:$0xff] %v4492_v1  ;;  %v4512_v21 = vsub.f32 %v4373_v27, %v4384_v31  ;;  %v4515_v23 = vpack.c.bf16 %v155_v2, %v145_v62  ;;  %v175_v29 = vand.u32 4294901760, %v174_v5  ;;  %v4518_v49 = vand.u32 4294901760, %v4498_v7 }
  0x23   :  { %5273 = vst [vmem:[#allocation7_spill] sm:$0xff] %v4508_v20  ;;  %v4522_v54 = vsub.f32 %v4375_v28, %v4387_v32  ;;  %v185_v58 = vand.u32 4294901760, %v184_v8  ;;  %v195_v63 = vand.u32 4294901760, %v194_v14  ;;  %v204_v27 = vsub.f32 %v4489_v0, %v4508_v20 }
  0x24   :  { %3724 = vmatpush3.bf16.msra.mxu0 %v4364_v24  ;;  %3916 = vmatpush3.bf16.msra.mxu1 %v4364_v24  ;;  %5274 = vst [vmem:[#allocation8_spill] sm:$0xff] %v4515_v23  ;;  %5275 = vst [vmem:[#allocation9_spill] sm:$0xff] %v4518_v49  ;;  %v4530_v5 = vand.u32 4294901760, %v4512_v21  ;;  %v4534_v28 = vsub.f32 %v4389_v33, %v4400_v36  ;;  %v214_v8 = vsub.f32 %v4498_v7, %v4518_v49 }
  0x25   :  { %3726 = vmatprep.subr.bf16.mxu0 %v4381_v30  ;;  %3918 = vmatprep.subr.bf16.mxu1 %v4381_v30  ;;  %v4542_v14 = vand.u32 4294901760, %v4522_v54  ;;  %v205_v33 = vand.u32 4294901760, %v204_v27  ;;  %v4558_v49 = vsub.f32 %v4413_v40, %v4427_v44 }
  0x26   :  { %5276 = vst [vmem:[#allocation10_spill] sm:$0xff] %v4530_v5  ;;  %v224_v20 = vsub.f32 %v4512_v21, %v4530_v5  ;;  %v4554_v61 = vand.u32 4294901760, %v4534_v28 }
  0x27   :  { %5278 = vst [vmem:[#allocation12_spill] sm:$0xff] %v4542_v14 }
  0x28   :  { %3728 = vmatpush3.bf16.msra.mxu0 %v4381_v30  ;;  %3920 = vmatpush3.bf16.msra.mxu1 %v4381_v30  ;;  %5279 = vst [vmem:[#allocation13_spill] sm:$0xff] %v4554_v61  ;;  %v225_v27 = vand.u32 4294901760, %v224_v20  ;;  %v244_v40 = vsub.f32 %v4534_v28, %v4554_v61 }
  0x29   :  { %3730 = vmatprep.subr.bf16.mxu0 %v4408_v38  ;;  %3922 = vmatprep.subr.bf16.mxu1 %v4408_v38 }
  0x2a   :  { %v245_v20 = vand.u32 4294901760, %v244_v40 }
  0x2c   :  { %3732 = vmatpush3.bf16.msra.mxu0 %v4408_v38  ;;  %3924 = vmatpush3.bf16.msra.mxu1 %v4408_v38 }
  0x2d   :  { %3734 = vmatprep.subr.bf16.mxu0 %v4441_v48  ;;  %3926 = vmatprep.subr.bf16.mxu1 %v4441_v48 }
  0x30   :  { %3736 = vmatpush3.bf16.msra.mxu0 %v4441_v48  ;;  %3928 = vmatpush3.bf16.msra.mxu1 %v4441_v48 }
  0x31   :  { %3738 = vmatprep.subr.bf16.mxu0 %v4469_v56  ;;  %3930 = vmatprep.subr.bf16.mxu1 %v4469_v56 }
  0x34   :  { %3740 = vmatpush3.bf16.msra.mxu0 %v4469_v56  ;;  %3932 = vmatpush3.bf16.msra.mxu1 %v4469_v56 }
  0x35   :  { %3742 = vmatprep.subr.bf16.mxu0 %v4492_v1  ;;  %3934 = vmatprep.subr.bf16.mxu1 %v4492_v1 }
  0x37   :  { %3070 = vmatmul.mubr.f32.vlgmr.msra.gmra.mrb[0].mxu0 %v135_v57  ;;  %v4537_v57 = vpack.c.bf16 %v175_v29, %v165_v15 }
  0x38   :  { %3744 = vmatpush3.bf16.msra.mxu0 %v4492_v1  ;;  %3072 = vmatprep.mubr.f32.mxu0 %v145_v62  ;;  %v4546_v62 = vsub.f32 %v4395_v35, %v4411_v39  ;;  %v4548_v1 = vpack.c.bf16 %v195_v63, %v185_v58  ;;  %v215_v35 = vand.u32 4294901760, %v214_v8  ;;  %v4574_v8 = vand.u32 4294901760, %v4558_v49 }
  0x39   :  { %3746 = vmatprep.subr.bf16.mxu0 %v4515_v23  ;;  %5277 = vst [vmem:[#allocation11_spill] sm:$0xff] %v4537_v57 }
  0x3a   :  { %v264_v61 = vsub.f32 %v4558_v49, %v4574_v8 }
  0x3b   :  { %3073 = vmatmul.mubr.f32.gmra.mrb[2].mxu0 %v155_v2  ;;  %v234_v2 = vsub.f32 %v4522_v54, %v4542_v14  ;;  %v4577_v14 = vpack.c.bf16 %v215_v35, %v205_v33 }
  0x3c   :  { %3748 = vmatpush3.bf16.msra.mxu0 %v4515_v23  ;;  %3075 = vmatprep.mubr.f32.mxu0 %v165_v15  ;;  %v4564_v23 = vand.u32 4294901760, %v4546_v62  ;;  %v4568_v15 = vsub.f32 %v4415_v41, %v4430_v45 }
  0x3d   :  { %3750 = vmatprep.subr.bf16.mxu0 %v4537_v57  ;;  %v235_v5 = vand.u32 4294901760, %v234_v2 }
  0x3e   :  { %v254_v41 = vsub.f32 %v4546_v62, %v4564_v23 }
  0x3f   :  { %3076 = vmatmul.mubr.f32.gmra.mrb[4].mxu0 %v175_v29  ;;  %v4582_v29 = vand.u32 4294901760, %v4568_v15 }
  0x40   :  { %3752 = vmatpush3.bf16.msra.mxu0 %v4537_v57  ;;  %3078 = vmatprep.mubr.f32.mxu0 %v185_v58  ;;  %v4586_v58 = vpack.c.bf16 %v235_v5, %v225_v27  ;;  %v255_v57 = vand.u32 4294901760, %v254_v41 }
  0x41   :  { %3754 = vmatprep.subr.bf16.mxu0 %v4548_v1  ;;  %v274_v2 = vsub.f32 %v4568_v15, %v4582_v29 }
  0x43   :  { %3079 = vmatmul.mubr.f32.gmra.mrb[6].mxu0 %v195_v63  ;;  %v4594_v63 = vpack.c.bf16 %v255_v57, %v245_v20  ;;  %v275_v40 = vand.u32 4294901760, %v274_v2  ;;  %v4651_v2 = vpack.c.bf16 %v4546_v62, %v4534_v28 }
  0x44   :  { %3756 = vmatpush3.bf16.msra.mxu0 %v4548_v1  ;;  %3081 = vmatprep.mubr.f32.mxu0 %v205_v33  ;;  %v265_v33 = vand.u32 4294901760, %v264_v61  ;;  %v4611_v61 = vpack.c.bf16 %v4421_v43, %v4403_v37 }
  0x45   :  { %3758 = vmatprep.subr.bf16.mxu0 %v4577_v14 }
  0x46   :  { %v4598_v41 = vpack.c.bf16 %v275_v40, %v265_v33 }
  0x47   :  { %3082 = vmatmul.mubr.f32.gmra.mrb[8].mxu0 %v215_v35  ;;  %v4604_v35 = vpack.c.bf16 %v4392_v34, %v4337_v16 }
  0x48   :  { %3760 = vmatpush3.bf16.msra.mxu0 %v4577_v14  ;;  %3084 = vmatprep.mubr.f32.mxu0 %v225_v27  ;;  %v4635_v27 = vpack.c.bf16 %v4498_v7, %v4489_v0 }
  0x49   :  { %3762 = vmatprep.subr.bf16.mxu0 %v4586_v58 }
  0x4b   :  { %3085 = vmatmul.mubr.f32.gmra.mrb[10].mxu0 %v235_v5  ;;  %v4619_v5 = vpack.c.bf16 %v4450_v51, %v4436_v47 }
  0x4c   :  { %3764 = vmatpush3.bf16.msra.mxu0 %v4586_v58  ;;  %3087 = vmatprep.mubr.f32.mxu0 %v245_v20  ;;  %v4643_v20 = vpack.c.bf16 %v4522_v54, %v4512_v21 }
  0x4d   :  { %3766 = vmatprep.subr.bf16.mxu0 %v4594_v63 }
  0x4f   :  { %3088 = vmatmul.mubr.f32.gmra.mrb[12].mxu0 %v255_v57  ;;  %v4627_v57 = vpack.c.bf16 %v4458_v53, %v4455_v52 }
  0x50   :  { %3768 = vmatpush3.bf16.msra.mxu0 %v4594_v63  ;;  %3090 = vmatprep.mubr.f32.mxu0 %v265_v33  ;;  %v4659_v33 = vpack.c.bf16 %v4568_v15, %v4558_v49 }
  0x51   :  { %3770 = vmatprep.subr.bf16.mxu0 %v4598_v41 }
  0x53   :  { %3091 = vmatmul.mubr.f32.gmra.mrb[14].mxu0 %v275_v40 }
  0x54   :  { %3772 = vmatpush3.bf16.msra.mxu0 %v4598_v41  ;;  %3125 = vmatprep.mubr.f32.mxu0 %v4310_v3 }
  0x55   :  { %3774 = vmatprep.subr.bf16.mxu0 %v4604_v35 }
  0x57   :  { %3126 = vmatmul.mubr.f32.vlgmr.msra.gmra.mrb[0].mxu0 %v4312_v4 }
  0x58   :  { %3776 = vmatpush3.bf16.msra.mxu0 %v4604_v35  ;;  %3128 = vmatprep.mubr.f32.mxu0 %v4314_v6 }
  0x59   :  { %3778 = vmatprep.subr.bf16.mxu0 %v4611_v61 }
  0x5b   :  { %3129 = vmatmul.mubr.f32.gmra.mrb[2].mxu0 %v4318_v9 }
  0x5c   :  { %3780 = vmatpush3.bf16.msra.mxu0 %v4611_v61  ;;  %3131 = vmatprep.mubr.f32.mxu0 %v4324_v11 }
  0x5d   :  { %3782 = vmatprep.subr.bf16.mxu0 %v4619_v5 }
  0x5f   :  { %3132 = vmatmul.mubr.f32.gmra.mrb[4].mxu0 %v4327_v12 }
  0x60   :  { %3784 = vmatpush3.bf16.msra.mxu0 %v4619_v5  ;;  %3134 = vmatprep.mubr.f32.mxu0 %v4345_v18 }
  0x61   :  { %3786 = vmatprep.subr.bf16.mxu0 %v4627_v57 }
  0x63   :  { %3135 = vmatmul.mubr.f32.gmra.mrb[6].mxu0 %v4347_v19 }
  0x64   :  { %3788 = vmatpush3.bf16.msra.mxu0 %v4627_v57  ;;  %3137 = vmatprep.mubr.f32.mxu0 %v4367_v25 }
  0x65   :  { %3790 = vmatprep.subr.bf16.mxu0 %v4635_v27 }
  0x67   :  { %3138 = vmatmul.mubr.f32.gmra.mrb[8].mxu0 %v4370_v26 }
  0x68   :  { %3792 = vmatpush3.bf16.msra.mxu0 %v4635_v27  ;;  %3140 = vmatprep.mubr.f32.mxu0 %v4384_v31 }
  0x69   :  { %3794 = vmatprep.subr.bf16.mxu0 %v4643_v20 }
  0x6b   :  { %3141 = vmatmul.mubr.f32.gmra.mrb[10].mxu0 %v4387_v32 }
  0x6c   :  { %3796 = vmatpush3.bf16.msra.mxu0 %v4643_v20  ;;  %3143 = vmatprep.mubr.f32.mxu0 %v4400_v36 }
  0x6d   :  { %3798 = vmatprep.subr.bf16.mxu0 %v4651_v2 }
  0x6f   :  { %3144 = vmatmul.mubr.f32.gmra.mrb[12].mxu0 %v4411_v39 }
  0x70   :  { %3800 = vmatpush3.bf16.msra.mxu0 %v4651_v2  ;;  %3146 = vmatprep.mubr.f32.mxu0 %v4427_v44 }
  0x71   :  { %3802 = vmatprep.subr.bf16.mxu0 %v4659_v33 }
  0x73   :  { %3147 = vmatmul.mubr.f32.gmra.mrb[14].mxu0 %v4430_v45 }
  0x74   :  { %3804 = vmatpush3.bf16.msra.mxu0 %v4659_v33  ;;  %3181 = vmatprep.mubr.f32.mxu0 %v4337_v16  ;;  %v4699_v16 = vpack.c.bf16 %v4418_v42, %v4354_v22 }
  0x75   :  { %3806 = vmatprep.subr.bf16.mxu0 %v4322_v10 }
  0x77   :  { %3182 = vmatmul.mubr.f32.vlgmr.msra.gmra.mrb[0].mxu0 %v4392_v34  ;;  %v4707_v34 = vpack.c.bf16 %v4446_v50, %v4433_v46 }
  0x78   :  { %3808 = vmatpush3.bf16.msra.mxu0 %v4322_v10  ;;  %3184 = vmatprep.mubr.f32.mxu0 %v4403_v37  ;;  %v4715_v37 = vpack.c.bf16 %v4474_v59, %v4464_v55 }
  0x79   :  { %3810 = vmatprep.subr.bf16.mxu0 %v4331_v13 }
  0x7a   :  { %5280 = vst [vmem:[#allocation14_spill] sm:$0xff] %v4715_v37 }
  0x7b   :  { %3185 = vmatmul.mubr.f32.gmra.mrb[2].mxu0 %v4421_v43  ;;  %v5283_v43 = vld [vmem:[#allocation7_spill] sm:$0xff] }
  0x7c   :  { %3812 = vmatpush3.bf16.msra.mxu0 %v4331_v13  ;;  %3187 = vmatprep.mubr.f32.mxu0 %v4436_v47 }
  0x7d   :  { %3814 = vmatprep.subr.bf16.mxu0 %v4343_v17 }
  0x7f   :  { %3188 = vmatmul.mubr.f32.gmra.mrb[4].mxu0 %v4450_v51  ;;  %v5287_v51 = vld [vmem:[#allocation12_spill] sm:$0xff] }
  0x80   :  { %3816 = vmatpush3.bf16.msra.mxu0 %v4343_v17  ;;  %3190 = vmatprep.mubr.f32.mxu0 %v4455_v52 }
  0x81   :  { %3818 = vmatprep.subr.bf16.mxu0 %v4364_v24 }
  0x83   :  { %3191 = vmatmul.mubr.f32.gmra.mrb[6].mxu0 %v4458_v53  ;;  %v5289_v53 = vld [vmem:[#allocation13_spill] sm:$0xff] }
  0x84   :  { %3820 = vmatpush3.bf16.msra.mxu0 %v4364_v24  ;;  %3193 = vmatprep.mubr.f32.mxu0 %v4489_v0 }
  0x85   :  { %3822 = vmatprep.subr.bf16.mxu0 %v4381_v30 }
  0x87   :  { %3194 = vmatmul.mubr.f32.gmra.mrb[8].mxu0 %v4498_v7 }
  0x88   :  { %3824 = vmatpush3.bf16.msra.mxu0 %v4381_v30  ;;  %3196 = vmatprep.mubr.f32.mxu0 %v4512_v21 }
  0x89   :  { %3826 = vmatprep.subr.bf16.mxu0 %v4408_v38 }
  0x8b   :  { %3197 = vmatmul.mubr.f32.gmra.mrb[10].mxu0 %v4522_v54 }
  0x8c   :  { %3828 = vmatpush3.bf16.msra.mxu0 %v4408_v38  ;;  %3199 = vmatprep.mubr.f32.mxu0 %v4534_v28 }
  0x8d   :  { %3830 = vmatprep.subr.bf16.mxu0 %v4441_v48 }
  0x8f   :  { %3200 = vmatmul.mubr.f32.gmra.mrb[12].mxu0 %v4546_v62 }
  0x90   :  { %3832 = vmatpush3.bf16.msra.mxu0 %v4441_v48  ;;  %3202 = vmatprep.mubr.f32.mxu0 %v4558_v49 }
  0x91   :  { %3834 = vmatprep.subr.bf16.mxu0 %v4469_v56 }
  0x93   :  { %3203 = vmatmul.mubr.f32.gmra.mrb[14].mxu0 %v4568_v15 }
  0x94   :  { %3836 = vmatpush3.bf16.msra.mxu0 %v4469_v56  ;;  %3237 = vmatprep.mubr.f32.mxu0 %v4354_v22  ;;  %v5281_v22 = vld [vmem:[#allocation5_spill] sm:$0xff] }
  0x95   :  { %3838 = vmatprep.subr.bf16.mxu0 %v4699_v16 }
  0x97   :  { %3238 = vmatmul.mubr.f32.vlgmr.msra.gmra.mrb[0].mxu0 %v4418_v42  ;;  %v4723_v42 = vpack.c.bf16 %v5281_v22, %v4478_v60 }
  0x98   :  { %3840 = vmatpush3.bf16.msra.mxu0 %v4699_v16  ;;  %3240 = vmatprep.mubr.f32.mxu0 %v4433_v46  ;;  %v5284_v46 = vld [vmem:[#allocation9_spill] sm:$0xff] }
  0x99   :  { %3842 = vmatprep.subr.bf16.mxu0 %v4707_v34  ;;  %5282 = vst [vmem:[#allocation5_spill] sm:$0xff] %v4723_v42  ;;  %v4731_v47 = vpack.c.bf16 %v5284_v46, %v5283_v43 }
  0x9b   :  { %3241 = vmatmul.mubr.f32.gmra.mrb[2].mxu0 %v4446_v50  ;;  %5285 = vst [vmem:[#allocation7_spill] sm:$0xff] %v4731_v47  ;;  %v5286_v50 = vld [vmem:[#allocation10_spill] sm:$0xff] }
  0x9c   :  { %3844 = vmatpush3.bf16.msra.mxu0 %v4707_v34  ;;  %3243 = vmatprep.mubr.f32.mxu0 %v4464_v55  ;;  %v4739_v52 = vpack.c.bf16 %v5287_v51, %v5286_v50  ;;  %v4747_v55 = vpack.c.bf16 %v4564_v23, %v5289_v53 }
  0x9d   :  { %3846 = vmatprep.subr.bf16.mxu0 %v4715_v37 }
  0x9e   :  { %5288 = vst [vmem:[#allocation9_spill] sm:$0xff] %v4739_v52  ;;  %5290 = vst [vmem:[#allocation10_spill] sm:$0xff] %v4747_v55 }
  0x9f   :  { %3244 = vmatmul.mubr.f32.gmra.mrb[4].mxu0 %v4474_v59  ;;  %v4755_v59 = vpack.c.bf16 %v4582_v29, %v4574_v8 }
  0xa0   :  { %3848 = vmatpush3.bf16.msra.mxu0 %v4715_v37  ;;  %3246 = vmatprep.mubr.f32.mxu0 %v4478_v60 }
  0xa1   :  { %3850 = vmatprep.subr.bf16.mxu0 %v4723_v42  ;;  %5291 = vst [vmem:[#allocation12_spill] sm:$0xff] %v4755_v59 }
  0xa3   :  { %3247 = vmatmul.mubr.f32.gmra.mrb[6].mxu0 %v5281_v22 }
  0xa4   :  { %3852 = vmatpush3.bf16.msra.mxu0 %v4723_v42  ;;  %3249 = vmatprep.mubr.f32.mxu0 %v5283_v43 }
  0xa5   :  { %3854 = vmatprep.subr.bf16.mxu0 %v4731_v47 }
  0xa7   :  { %3250 = vmatmul.mubr.f32.gmra.mrb[8].mxu0 %v5284_v46 }
  0xa8   :  { %3856 = vmatpush3.bf16.msra.mxu0 %v4731_v47  ;;  %3252 = vmatprep.mubr.f32.mxu0 %v5286_v50 }
  0xa9   :  { %3858 = vmatprep.subr.bf16.mxu0 %v4739_v52 }
  0xab   :  { %3253 = vmatmul.mubr.f32.gmra.mrb[10].mxu0 %v5287_v51  ;;  %v5292_v51 = vld [vmem:[#allocation6_spill] sm:$0xff] }
  0xac   :  { %3860 = vmatpush3.bf16.msra.mxu0 %v4739_v52  ;;  %3255 = vmatprep.mubr.f32.mxu0 %v5289_v53 }
  0xad   :  { %3862 = vmatprep.subr.bf16.mxu0 %v4747_v55 }
  0xaf   :  { %3256 = vmatmul.mubr.f32.gmra.mrb[12].mxu0 %v4564_v23 }
  0xb0   :  { %3864 = vmatpush3.bf16.msra.mxu0 %v4747_v55  ;;  %3258 = vmatprep.mubr.f32.mxu0 %v4574_v8 }
  0xb1   :  { %3866 = vmatprep.subr.bf16.mxu0 %v4755_v59 }
  0xb3   :  { %3259 = vmatmul.mubr.f32.gmra.mrb[14].mxu0 %v4582_v29 }
  0xb4   :  { %3868 = vmatpush3.bf16.msra.mxu0 %v4755_v59  ;;  %3293 = vmatprep.mubr.f32.mxu0 %v4310_v3 }
  0xb5   :  { %3870 = vmatprep.subr.bf16.mxu0 %v4322_v10 }
  0xb7   :  { %3294 = vmatmul.mubr.f32.vlgmr.msra.gmra.mrb[0].mxu0 %v4312_v4 }
  0xb8   :  { %3872 = vmatpush3.bf16.msra.mxu0 %v4322_v10  ;;  %3296 = vmatprep.mubr.f32.mxu0 %v4314_v6 }
  0xb9   :  { %3874 = vmatprep.subr.bf16.mxu0 %v4331_v13 }
  0xbb   :  { %3297 = vmatmul.mubr.f32.gmra.mrb[2].mxu0 %v4318_v9 }
  0xbc   :  { %3876 = vmatpush3.bf16.msra.mxu0 %v4331_v13  ;;  %3299 = vmatprep.mubr.f32.mxu0 %v4324_v11 }
  0xbd   :  { %3878 = vmatprep.subr.bf16.mxu0 %v4343_v17 }
  0xbf   :  { %3300 = vmatmul.mubr.f32.gmra.mrb[4].mxu0 %v4327_v12 }
  0xc0   :  { %3880 = vmatpush3.bf16.msra.mxu0 %v4343_v17  ;;  %3302 = vmatprep.mubr.f32.mxu0 %v4345_v18 }
  0xc1   :  { %3882 = vmatprep.subr.bf16.mxu0 %v4364_v24 }
  0xc3   :  { %3303 = vmatmul.mubr.f32.gmra.mrb[6].mxu0 %v4347_v19 }
  0xc4   :  { %3884 = vmatpush3.bf16.msra.mxu0 %v4364_v24  ;;  %3305 = vmatprep.mubr.f32.mxu0 %v4367_v25 }
  0xc5   :  { %3886 = vmatprep.subr.bf16.mxu0 %v4381_v30 }
  0xc7   :  { %3306 = vmatmul.mubr.f32.gmra.mrb[8].mxu0 %v4370_v26 }
  0xc8   :  { %3888 = vmatpush3.bf16.msra.mxu0 %v4381_v30  ;;  %3308 = vmatprep.mubr.f32.mxu0 %v4384_v31 }
  0xc9   :  { %3890 = vmatprep.subr.bf16.mxu0 %v4408_v38 }
  0xcb   :  { %3309 = vmatmul.mubr.f32.gmra.mrb[10].mxu0 %v4387_v32 }
  0xcc   :  { %3892 = vmatpush3.bf16.msra.mxu0 %v4408_v38  ;;  %3311 = vmatprep.mubr.f32.mxu0 %v4400_v36 }
  0xcd   :  { %3894 = vmatprep.subr.bf16.mxu0 %v4441_v48 }
  0xcf   :  { %3312 = vmatmul.mubr.f32.gmra.mrb[12].mxu0 %v4411_v39 }
  0xd0   :  { %3896 = vmatpush3.bf16.msra.mxu0 %v4441_v48  ;;  %3314 = vmatprep.mubr.f32.mxu0 %v4427_v44 }
  0xd1   :  { %3898 = vmatprep.subr.bf16.mxu0 %v4469_v56 }
  0xd3   :  { %3315 = vmatmul.mubr.f32.gmra.mrb[14].mxu0 %v4430_v45 }
  0xd4   :  { %3900 = vmatpush3.bf16.msra.mxu0 %v4469_v56  ;;  %3349 = vmatprep.mubr.f32.mxu0 %v4310_v3 }
  0xd7   :  { %3350 = vmatmul.mubr.f32.vlgmr.msra.gmra.mrb[0].mxu0 %v4312_v4 }
  0xd8   :  { %3352 = vmatprep.mubr.f32.mxu0 %v4314_v6 }
  0xdb   :  { %3353 = vmatmul.mubr.f32.gmra.mrb[2].mxu0 %v4318_v9 }
  0xdc   :  { %3355 = vmatprep.mubr.f32.mxu0 %v4324_v11 }
  0xdf   :  { %3356 = vmatmul.mubr.f32.gmra.mrb[4].mxu0 %v4327_v12 }
  0xe0   :  { %3358 = vmatprep.mubr.f32.mxu0 %v4345_v18 }
  0xe3   :  { %3359 = vmatmul.mubr.f32.gmra.mrb[6].mxu0 %v4347_v19 }
  0xe4   :  { %3361 = vmatprep.mubr.f32.mxu0 %v4367_v25 }
  0xe7   :  { %3362 = vmatmul.mubr.f32.gmra.mrb[8].mxu0 %v4370_v26 }
  0xe8   :  { %3364 = vmatprep.mubr.f32.mxu0 %v4384_v31 }
  0xeb   :  { %3365 = vmatmul.mubr.f32.gmra.mrb[10].mxu0 %v4387_v32 }
  0xec   :  { %3367 = vmatprep.mubr.f32.mxu0 %v4400_v36 }
  0xef   :  { %3368 = vmatmul.mubr.f32.gmra.mrb[12].mxu0 %v4411_v39 }
  0xf0   :  { %3370 = vmatprep.mubr.f32.mxu0 %v4427_v44 }
  0xf3   :  { %3371 = vmatmul.mubr.f32.gmra.mrb[14].mxu0 %v4430_v45 }
 0x1aa   :  { %v3351_v3 = vpop.f32.mrb[0].mxu0 }
 0x1ab   :  { %v4811_v4 = vand.u32 4294901760, %v3351_v3  ;;  %2613 = vst [vmem:[%s5227_s1 + $0x8] sm:$0xff] %v3351_v3  ;;  %v1232_v6 = vpop.f32.mrb[1].mxu0 }
 0x1ac   :  { %v4816_v9 = vand.u32 4294901760, %v1232_v6  ;;  %2612 = vst [vmem:[%s5227_s1] sm:$0xff] %v1232_v6 }
 0x1ad   :  { %v4822_v11 = vsub.f32 %v3351_v3, %v4811_v4 }
 0x1ae   :  { %v4825_v12 = vsub.f32 %v1232_v6, %v4816_v9  ;;  %v3354_v18 = vpop.f32.mrb[2].mxu0 }
 0x1af   :  { %v4827_v19 = vand.u32 4294901760, %v3354_v18  ;;  %2615 = vst [vmem:[%s5227_s1 + $0x18] sm:$0xff] %v3354_v18  ;;  %v1244_v25 = vpop.f32.mrb[3].mxu0  ;;  %v5252_v26 = vand.u32 4294901760, %v4822_v11 }
 0x1b0   :  { %v4833_v31 = vand.u32 4294901760, %v1244_v25  ;;  %2614 = vst [vmem:[%s5227_s1 + $0x10] sm:$0xff] %v1244_v25  ;;  %v5253_v32 = vand.u32 4294901760, %v4825_v12 }
 0x1b1   :  { %v4840_v36 = vsub.f32 %v3354_v18, %v4827_v19  ;;  %v1420_v39 = vsub.f32 %v4822_v11, %v5252_v26 }
 0x1b2   :  { %v4846_v44 = vsub.f32 %v1244_v25, %v4833_v31  ;;  %v3357_v45 = vpop.f32.mrb[4].mxu0  ;;  %v1410_v60 = vsub.f32 %v4825_v12, %v5253_v32  ;;  %v5293_v25 = vld [vmem:[#allocation8_spill] sm:$0xff] }
 0x1b3   :  { %v4851_v0 = vand.u32 4294901760, %v3357_v45  ;;  %2617 = vst [vmem:[%s5227_s1 + $0x28] sm:$0xff] %v3357_v45  ;;  %v1256_v7 = vpop.f32.mrb[5].mxu0  ;;  %v5248_v21 = vand.u32 4294901760, %v4840_v36  ;;  %v1421_v62 = vand.u32 4294901760, %v1420_v39 }
 0x1b4   :  { %v4857_v23 = vand.u32 4294901760, %v1256_v7  ;;  %2616 = vst [vmem:[%s5227_s1 + $0x20] sm:$0xff] %v1256_v7  ;;  %v1411_v49 = vand.u32 4294901760, %v1410_v60  ;;  %v5251_v54 = vand.u32 4294901760, %v4846_v44 }
 0x1b5   :  { %v4864_v28 = vsub.f32 %v3357_v45, %v4851_v0  ;;  %v1440_v15 = vsub.f32 %v4840_v36, %v5248_v21 }
 0x1b6   :  { %v4870_v8 = vsub.f32 %v1256_v7, %v4857_v23  ;;  %v3360_v29 = vpop.f32.mrb[6].mxu0  ;;  %3405 = vmatprep.mubr.f32.mxu1 %v1411_v49  ;;  %v1430_v40 = vsub.f32 %v4846_v44, %v5251_v54 }
 0x1b7   :  { %v4875_v22 = vand.u32 4294901760, %v3360_v29  ;;  %2619 = vst [vmem:[%s5227_s1 + $0x38] sm:$0xff] %v3360_v29  ;;  %v1268_v43 = vpop.f32.mrb[7].mxu0  ;;  %3406 = vmatmul.mubr.f32.vlgmr.msra.gmra.mrb[0].mxu1 %v1421_v62  ;;  %v5246_v46 = vand.u32 4294901760, %v4864_v28  ;;  %v1441_v18 = vand.u32 4294901760, %v1440_v15 }
 0x1b8   :  { %v4881_v50 = vand.u32 4294901760, %v1268_v43  ;;  %2618 = vst [vmem:[%s5227_s1 + $0x30] sm:$0xff] %v1268_v43  ;;  %3936 = vmatpush3.bf16.msra.mxu1 %v5292_v51  ;;  %v1431_v53 = vand.u32 4294901760, %v1430_v40  ;;  %v5247_v3 = vand.u32 4294901760, %v4870_v8 }
 0x1b9   :  { %v4889_v6 = vsub.f32 %v3360_v29, %v4875_v22  ;;  %3938 = vmatprep.subr.bf16.mxu1 %v5293_v25  ;;  %v1460_v39 = vsub.f32 %v4864_v28, %v5246_v46  ;;  %v5294_v46 = vld [vmem:[#allocation11_spill] sm:$0xff] }
 0x1ba   :  { %v4896_v45 = vsub.f32 %v1268_v43, %v4881_v50  ;;  %v3363_v60 = vpop.f32.mrb[8].mxu0  ;;  %3408 = vmatprep.mubr.f32.mxu1 %v1431_v53  ;;  %v1450_v7 = vsub.f32 %v4870_v8, %v5247_v3 }
 0x1bb   :  { %v4901_v49 = vand.u32 4294901760, %v3363_v60  ;;  %2621 = vst [vmem:[%s5227_s1 + $0x48] sm:$0xff] %v3363_v60  ;;  %v1280_v62 = vpop.f32.mrb[9].mxu0  ;;  %3409 = vmatmul.mubr.f32.gmra.mrb[2].mxu1 %v1441_v18  ;;  %v5249_v15 = vand.u32 4294901760, %v4889_v6  ;;  %v1461_v53 = vand.u32 4294901760, %v1460_v39 }
 0x1bc   :  { %v4907_v29 = vand.u32 4294901760, %v1280_v62  ;;  %2620 = vst [vmem:[%s5227_s1 + $0x40] sm:$0xff] %v1280_v62  ;;  %3940 = vmatpush3.bf16.msra.mxu1 %v5293_v25  ;;  %v1451_v40 = vand.u32 4294901760, %v1450_v7  ;;  %v5250_v43 = vand.u32 4294901760, %v4896_v45 }
 0x1bd   :  { %v4915_v51 = vsub.f32 %v3363_v60, %v4901_v49  ;;  %3942 = vmatprep.subr.bf16.mxu1 %v5294_v46  ;;  %v1480_v18 = vsub.f32 %v4889_v6, %v5249_v15 }
 0x1be   :  { %v4922_v3 = vsub.f32 %v1280_v62, %v4907_v29  ;;  %v3366_v21 = vpop.f32.mrb[10].mxu0  ;;  %3411 = vmatprep.mubr.f32.mxu1 %v1451_v40  ;;  %v1470_v25 = vsub.f32 %v4896_v45, %v5250_v43 }
 0x1bf   :  { %v4927_v7 = vand.u32 4294901760, %v3366_v21  ;;  %2623 = vst [vmem:[%s5227_s1 + $0x58] sm:$0xff] %v3366_v21  ;;  %v1292_v39 = vpop.f32.mrb[11].mxu0  ;;  %3412 = vmatmul.mubr.f32.gmra.mrb[4].mxu1 %v1461_v53  ;;  %v5254_v60 = vand.u32 4294901760, %v4915_v51  ;;  %v1481_v54 = vand.u32 4294901760, %v1480_v18 }
 0x1c0   :  { %v4933_v15 = vand.u32 4294901760, %v1292_v39  ;;  %2622 = vst [vmem:[%s5227_s1 + $0x50] sm:$0xff] %v1292_v39  ;;  %3944 = vmatpush3.bf16.msra.mxu1 %v5294_v46  ;;  %v1471_v62 = vand.u32 4294901760, %v1470_v25  ;;  %v5255_v40 = vand.u32 4294901760, %v4922_v3 }
 0x1c1   :  { %v4941_v43 = vsub.f32 %v3366_v21, %v4927_v7  ;;  %3946 = vmatprep.subr.bf16.mxu1 %v4548_v1  ;;  %v1500_v53 = vsub.f32 %v4915_v51, %v5254_v60 }
 0x1c2   :  { %v4948_v26 = vsub.f32 %v1292_v39, %v4933_v15  ;;  %v3369_v32 = vpop.f32.mrb[12].mxu0  ;;  %3414 = vmatprep.mubr.f32.mxu1 %v1471_v62  ;;  %v1490_v46 = vsub.f32 %v4922_v3, %v5255_v40 }
 0x1c3   :  { %v4953_v25 = vand.u32 4294901760, %v3369_v32  ;;  %2625 = vst [vmem:[%s5227_s1 + $0x68] sm:$0xff] %v3369_v32  ;;  %v1304_v21 = vpop.f32.mrb[13].mxu0  ;;  %3415 = vmatmul.mubr.f32.gmra.mrb[6].mxu1 %v1481_v54  ;;  %v5262_v18 = vand.u32 4294901760, %v4941_v43  ;;  %v1501_v59 = vand.u32 4294901760, %v1500_v53 }
 0x1c4   :  { %v4959_v60 = vand.u32 4294901760, %v1304_v21  ;;  %2624 = vst [vmem:[%s5227_s1 + $0x60] sm:$0xff] %v1304_v21  ;;  %3948 = vmatpush3.bf16.msra.mxu1 %v4548_v1  ;;  %v1491_v39 = vand.u32 4294901760, %v1490_v46  ;;  %v5263_v62 = vand.u32 4294901760, %v4948_v26 }
 0x1c5   :  { %v4967_v40 = vsub.f32 %v3369_v32, %v4953_v25  ;;  %3950 = vmatprep.subr.bf16.mxu1 %v4577_v14  ;;  %v1520_v54 = vsub.f32 %v4941_v43, %v5262_v18 }
 0x1c6   :  { %v4974_v55 = vsub.f32 %v1304_v21, %v4959_v60  ;;  %v3372_v52 = vpop.f32.mrb[14].mxu0  ;;  %3417 = vmatprep.mubr.f32.mxu1 %v1491_v39  ;;  %v1510_v1 = vsub.f32 %v4948_v26, %v5263_v62 }
 0x1c7   :  { %v4979_v46 = vand.u32 4294901760, %v3372_v52  ;;  %2627 = vst [vmem:[%s5227_s1 + $0x78] sm:$0xff] %v3372_v52  ;;  %v1316_v32 = vpop.f32.mrb[15].mxu0  ;;  %3418 = vmatmul.mubr.f32.gmra.mrb[8].mxu1 %v1501_v59  ;;  %v5270_v53 = vand.u32 4294901760, %v4967_v40  ;;  %v1521_v47 = vand.u32 4294901760, %v1520_v54 }
 0x1c8   :  { %v4985_v18 = vand.u32 4294901760, %v1316_v32  ;;  %2626 = vst [vmem:[%s5227_s1 + $0x70] sm:$0xff] %v1316_v32  ;;  %3952 = vmatpush3.bf16.msra.mxu1 %v4577_v14  ;;  %v1511_v21 = vand.u32 4294901760, %v1510_v1  ;;  %v1529_v39 = vand.u32 4294901760, %v4974_v55 }
 0x1c9   :  { %v4993_v62 = vsub.f32 %v3372_v52, %v4979_v46  ;;  %3954 = vmatprep.subr.bf16.mxu1 %v4586_v58  ;;  %v1540_v59 = vsub.f32 %v4967_v40, %v5270_v53 }
 0x1ca   :  { %v5000_v42 = vsub.f32 %v1316_v32, %v4985_v18  ;;  %3420 = vmatprep.mubr.f32.mxu1 %v1511_v21  ;;  %v1530_v14 = vsub.f32 %v4974_v55, %v1529_v39 }
 0x1cb   :  { %3421 = vmatmul.mubr.f32.gmra.mrb[10].mxu1 %v1521_v47  ;;  %v1559_v1 = vand.u32 4294901760, %v4993_v62  ;;  %v1541_v37 = vand.u32 4294901760, %v1540_v59 }
 0x1cc   :  { %v1549_v52 = vand.u32 4294901760, %v5000_v42  ;;  %3956 = vmatpush3.bf16.msra.mxu1 %v4586_v58  ;;  %v1531_v54 = vand.u32 4294901760, %v1530_v14  ;;  %v5295_v58 = vand.u32 4294901760, %v4825_v12 }
 0x1cd   :  { %3958 = vmatprep.subr.bf16.mxu1 %v4594_v63  ;;  %v1560_v32 = vsub.f32 %v4993_v62, %v1559_v1 }
 0x1ce   :  { %3423 = vmatprep.mubr.f32.mxu1 %v1531_v54  ;;  %v1550_v21 = vsub.f32 %v5000_v42, %v1549_v52 }
 0x1cf   :  { %3424 = vmatmul.mubr.f32.gmra.mrb[12].mxu1 %v1541_v37  ;;  %v1561_v53 = vand.u32 4294901760, %v1560_v32  ;;  %v5308_v37 = vand.u32 4294901760, %v4948_v26 }
 0x1d0   :  { %3960 = vmatpush3.bf16.msra.mxu1 %v4594_v63  ;;  %v1551_v47 = vand.u32 4294901760, %v1550_v21  ;;  %v5296_v63 = vand.u32 4294901760, %v4822_v11 }
 0x1d1   :  { %3962 = vmatprep.subr.bf16.mxu1 %v4598_v41 }
 0x1d2   :  { %3426 = vmatprep.mubr.f32.mxu1 %v1551_v47 }
 0x1d3   :  { %3427 = vmatmul.mubr.f32.gmra.mrb[14].mxu1 %v1561_v53 }
 0x1d4   :  { %3964 = vmatpush3.bf16.msra.mxu1 %v4598_v41  ;;  %3461 = vmatprep.mubr.f32.mxu1 %v4816_v9  ;;  %v5297_v41 = vand.u32 4294901760, %v4846_v44 }
 0x1d5   :  { %3966 = vmatprep.subr.bf16.mxu1 %v4604_v35 }
 0x1d7   :  { %3462 = vmatmul.mubr.f32.vlgmr.msra.gmra.mrb[0].mxu1 %v4811_v4 }
 0x1d8   :  { %3464 = vmatprep.mubr.f32.mxu1 %v4833_v31  ;;  %3968 = vmatpush3.bf16.msra.mxu1 %v4604_v35  ;;  %v5298_v35 = vand.u32 4294901760, %v4840_v36 }
 0x1d9   :  { %3970 = vmatprep.subr.bf16.mxu1 %v4611_v61 }
 0x1db   :  { %3465 = vmatmul.mubr.f32.gmra.mrb[2].mxu1 %v4827_v19 }
 0x1dc   :  { %3467 = vmatprep.mubr.f32.mxu1 %v4857_v23  ;;  %3972 = vmatpush3.bf16.msra.mxu1 %v4611_v61  ;;  %v5299_v61 = vand.u32 4294901760, %v4870_v8 }
 0x1dd   :  { %3974 = vmatprep.subr.bf16.mxu1 %v4619_v5 }
 0x1df   :  { %3468 = vmatmul.mubr.f32.gmra.mrb[4].mxu1 %v4851_v0 }
 0x1e0   :  { %3470 = vmatprep.mubr.f32.mxu1 %v4881_v50  ;;  %3976 = vmatpush3.bf16.msra.mxu1 %v4619_v5  ;;  %v5300_v5 = vld [vmem:[#allocation14_spill] sm:$0xff] }
 0x1e1   :  { %3978 = vmatprep.subr.bf16.mxu1 %v4627_v57 }
 0x1e3   :  { %3471 = vmatmul.mubr.f32.gmra.mrb[6].mxu1 %v4875_v22 }
 0x1e4   :  { %3473 = vmatprep.mubr.f32.mxu1 %v4907_v29  ;;  %3980 = vmatpush3.bf16.msra.mxu1 %v4627_v57  ;;  %v5301_v57 = vand.u32 4294901760, %v4864_v28 }
 0x1e5   :  { %3982 = vmatprep.subr.bf16.mxu1 %v4635_v27 }
 0x1e7   :  { %3474 = vmatmul.mubr.f32.gmra.mrb[8].mxu1 %v4901_v49 }
 0x1e8   :  { %3476 = vmatprep.mubr.f32.mxu1 %v4933_v15  ;;  %3984 = vmatpush3.bf16.msra.mxu1 %v4635_v27  ;;  %v5302_v27 = vand.u32 4294901760, %v4896_v45 }
 0x1e9   :  { %3986 = vmatprep.subr.bf16.mxu1 %v4643_v20 }
 0x1eb   :  { %3477 = vmatmul.mubr.f32.gmra.mrb[10].mxu1 %v4927_v7 }
 0x1ec   :  { %3479 = vmatprep.mubr.f32.mxu1 %v4959_v60  ;;  %3988 = vmatpush3.bf16.msra.mxu1 %v4643_v20  ;;  %v5303_v20 = vld [vmem:[#allocation5_spill] sm:$0xff] }
 0x1ed   :  { %3990 = vmatprep.subr.bf16.mxu1 %v4651_v2 }
 0x1ef   :  { %3480 = vmatmul.mubr.f32.gmra.mrb[12].mxu1 %v4953_v25 }
 0x1f0   :  { %3482 = vmatprep.mubr.f32.mxu1 %v4985_v18  ;;  %3992 = vmatpush3.bf16.msra.mxu1 %v4651_v2  ;;  %v5304_v2 = vand.u32 4294901760, %v4889_v6 }
 0x1f1   :  { %3994 = vmatprep.subr.bf16.mxu1 %v4659_v33 }
 0x1f3   :  { %3483 = vmatmul.mubr.f32.gmra.mrb[14].mxu1 %v4979_v46 }
 0x1f4   :  { %3996 = vmatpush3.bf16.msra.mxu1 %v4659_v33  ;;  %3517 = vmatprep.mubr.f32.mxu1 %v4825_v12  ;;  %v5305_v33 = vand.u32 4294901760, %v4922_v3  ;;  %v5310_v12 = vand.u32 4294901760, %v4941_v43 }
 0x1f5   :  { %3998 = vmatprep.subr.bf16.mxu1 %v4322_v10 }
 0x1f7   :  { %3518 = vmatmul.mubr.f32.vlgmr.msra.gmra.mrb[0].mxu1 %v4822_v11  ;;  %v5309_v11 = vld [vmem:[#allocation9_spill] sm:$0xff] }
 0x1f8   :  { %3520 = vmatprep.mubr.f32.mxu1 %v4846_v44  ;;  %4000 = vmatpush3.bf16.msra.mxu1 %v4322_v10  ;;  %v5312_v44 = vand.u32 4294901760, %v4967_v40 }
 0x1f9   :  { %4002 = vmatprep.subr.bf16.mxu1 %v4331_v13 }
 0x1fb   :  { %3521 = vmatmul.mubr.f32.gmra.mrb[2].mxu1 %v4840_v36  ;;  %v5311_v36 = vld [vmem:[#allocation10_spill] sm:$0xff] }
 0x1fc   :  { %3523 = vmatprep.mubr.f32.mxu1 %v4870_v8  ;;  %4004 = vmatpush3.bf16.msra.mxu1 %v4331_v13 }
 0x1fd   :  { %4006 = vmatprep.subr.bf16.mxu1 %v4343_v17 }
 0x1ff   :  { %3524 = vmatmul.mubr.f32.gmra.mrb[4].mxu1 %v4864_v28 }
 0x200   :  { %3526 = vmatprep.mubr.f32.mxu1 %v4896_v45  ;;  %4008 = vmatpush3.bf16.msra.mxu1 %v4343_v17 }
 0x201   :  { %4010 = vmatprep.subr.bf16.mxu1 %v4364_v24 }
 0x203   :  { %3527 = vmatmul.mubr.f32.gmra.mrb[6].mxu1 %v4889_v6 }
 0x204   :  { %3529 = vmatprep.mubr.f32.mxu1 %v4922_v3  ;;  %4012 = vmatpush3.bf16.msra.mxu1 %v4364_v24 }
 0x205   :  { %4014 = vmatprep.subr.bf16.mxu1 %v4381_v30 }
 0x207   :  { %3530 = vmatmul.mubr.f32.gmra.mrb[8].mxu1 %v4915_v51 }
 0x208   :  { %3532 = vmatprep.mubr.f32.mxu1 %v4948_v26  ;;  %4016 = vmatpush3.bf16.msra.mxu1 %v4381_v30  ;;  %v5313_v26 = vld [vmem:[#allocation12_spill] sm:$0xff] }
 0x209   :  { %4018 = vmatprep.subr.bf16.mxu1 %v4408_v38 }
 0x20b   :  { %3533 = vmatmul.mubr.f32.gmra.mrb[10].mxu1 %v4941_v43 }
 0x20c   :  { %3535 = vmatprep.mubr.f32.mxu1 %v4974_v55  ;;  %4020 = vmatpush3.bf16.msra.mxu1 %v4408_v38 }
 0x20d   :  { %4022 = vmatprep.subr.bf16.mxu1 %v4441_v48 }
 0x20f   :  { %3536 = vmatmul.mubr.f32.gmra.mrb[12].mxu1 %v4967_v40 }
 0x210   :  { %3538 = vmatprep.mubr.f32.mxu1 %v5000_v42  ;;  %4024 = vmatpush3.bf16.msra.mxu1 %v4441_v48 }
 0x211   :  { %4026 = vmatprep.subr.bf16.mxu1 %v4469_v56 }
 0x213   :  { %3539 = vmatmul.mubr.f32.gmra.mrb[14].mxu1 %v4993_v62 }
 0x214   :  { %4028 = vmatpush3.bf16.msra.mxu1 %v4469_v56  ;;  %3573 = vmatprep.mubr.f32.mxu1 %v5295_v58 }
 0x215   :  { %4030 = vmatprep.subr.bf16.mxu1 %v4699_v16 }
 0x217   :  { %3574 = vmatmul.mubr.f32.vlgmr.msra.gmra.mrb[0].mxu1 %v5296_v63 }
 0x218   :  { %3576 = vmatprep.mubr.f32.mxu1 %v5297_v41  ;;  %4032 = vmatpush3.bf16.msra.mxu1 %v4699_v16  ;;  %v5306_v16 = vld [vmem:[#allocation7_spill] sm:$0xff] }
 0x219   :  { %4034 = vmatprep.subr.bf16.mxu1 %v4707_v34 }
 0x21b   :  { %3577 = vmatmul.mubr.f32.gmra.mrb[2].mxu1 %v5298_v35 }
 0x21c   :  { %3579 = vmatprep.mubr.f32.mxu1 %v5299_v61  ;;  %4036 = vmatpush3.bf16.msra.mxu1 %v4707_v34  ;;  %v5307_v34 = vand.u32 4294901760, %v4915_v51 }
 0x21d   :  { %4038 = vmatprep.subr.bf16.mxu1 %v5300_v5 }
 0x21f   :  { %3580 = vmatmul.mubr.f32.gmra.mrb[4].mxu1 %v5301_v57 }
 0x220   :  { %3582 = vmatprep.mubr.f32.mxu1 %v5302_v27  ;;  %4040 = vmatpush3.bf16.msra.mxu1 %v5300_v5 }
 0x221   :  { %4042 = vmatprep.subr.bf16.mxu1 %v5303_v20 }
 0x223   :  { %3583 = vmatmul.mubr.f32.gmra.mrb[6].mxu1 %v5304_v2 }
 0x224   :  { %3585 = vmatprep.mubr.f32.mxu1 %v5305_v33  ;;  %4044 = vmatpush3.bf16.msra.mxu1 %v5303_v20 }
 0x225   :  { %4046 = vmatprep.subr.bf16.mxu1 %v5306_v16 }
 0x227   :  { %3586 = vmatmul.mubr.f32.gmra.mrb[8].mxu1 %v5307_v34 }
 0x228   :  { %3588 = vmatprep.mubr.f32.mxu1 %v5308_v37  ;;  %4048 = vmatpush3.bf16.msra.mxu1 %v5306_v16 }
 0x229   :  { %4050 = vmatprep.subr.bf16.mxu1 %v5309_v11 }
 0x22b   :  { %3589 = vmatmul.mubr.f32.gmra.mrb[10].mxu1 %v5310_v12 }
 0x22c   :  { %3591 = vmatprep.mubr.f32.mxu1 %v1529_v39  ;;  %4052 = vmatpush3.bf16.msra.mxu1 %v5309_v11 }
 0x22d   :  { %4054 = vmatprep.subr.bf16.mxu1 %v5311_v36 }
 0x22f   :  { %3592 = vmatmul.mubr.f32.gmra.mrb[12].mxu1 %v5312_v44 }
 0x230   :  { %3594 = vmatprep.mubr.f32.mxu1 %v1549_v52  ;;  %4056 = vmatpush3.bf16.msra.mxu1 %v5311_v36 }
 0x231   :  { %4058 = vmatprep.subr.bf16.mxu1 %v5313_v26 }
 0x233   :  { %3595 = vmatmul.mubr.f32.gmra.mrb[14].mxu1 %v1559_v1 }
 0x234   :  { %4060 = vmatpush3.bf16.msra.mxu1 %v5313_v26  ;;  %3629 = vmatprep.mubr.f32.mxu1 %v4816_v9 }
 0x235   :  { %4062 = vmatprep.subr.bf16.mxu1 %v4322_v10 }
 0x237   :  { %3630 = vmatmul.mubr.f32.vlgmr.msra.gmra.mrb[0].mxu1 %v4811_v4 }
 0x238   :  { %3632 = vmatprep.mubr.f32.mxu1 %v4833_v31  ;;  %4064 = vmatpush3.bf16.msra.mxu1 %v4322_v10 }
 0x239   :  { %4066 = vmatprep.subr.bf16.mxu1 %v4331_v13 }
 0x23b   :  { %3633 = vmatmul.mubr.f32.gmra.mrb[2].mxu1 %v4827_v19 }
 0x23c   :  { %3635 = vmatprep.mubr.f32.mxu1 %v4857_v23  ;;  %4068 = vmatpush3.bf16.msra.mxu1 %v4331_v13 }
 0x23d   :  { %4070 = vmatprep.subr.bf16.mxu1 %v4343_v17 }
 0x23f   :  { %3636 = vmatmul.mubr.f32.gmra.mrb[4].mxu1 %v4851_v0 }
 0x240   :  { %3638 = vmatprep.mubr.f32.mxu1 %v4881_v50  ;;  %4072 = vmatpush3.bf16.msra.mxu1 %v4343_v17 }
 0x241   :  { %4074 = vmatprep.subr.bf16.mxu1 %v4364_v24 }
 0x243   :  { %3639 = vmatmul.mubr.f32.gmra.mrb[6].mxu1 %v4875_v22 }
 0x244   :  { %3641 = vmatprep.mubr.f32.mxu1 %v4907_v29  ;;  %4076 = vmatpush3.bf16.msra.mxu1 %v4364_v24 }
 0x245   :  { %4078 = vmatprep.subr.bf16.mxu1 %v4381_v30 }
 0x247   :  { %3642 = vmatmul.mubr.f32.gmra.mrb[8].mxu1 %v4901_v49 }
 0x248   :  { %3644 = vmatprep.mubr.f32.mxu1 %v4933_v15  ;;  %4080 = vmatpush3.bf16.msra.mxu1 %v4381_v30 }
 0x249   :  { %4082 = vmatprep.subr.bf16.mxu1 %v4408_v38 }
 0x24b   :  { %3645 = vmatmul.mubr.f32.gmra.mrb[10].mxu1 %v4927_v7 }
 0x24c   :  { %3647 = vmatprep.mubr.f32.mxu1 %v4959_v60  ;;  %4084 = vmatpush3.bf16.msra.mxu1 %v4408_v38 }
 0x24d   :  { %4086 = vmatprep.subr.bf16.mxu1 %v4441_v48 }
 0x24f   :  { %3648 = vmatmul.mubr.f32.gmra.mrb[12].mxu1 %v4953_v25 }
 0x250   :  { %3650 = vmatprep.mubr.f32.mxu1 %v4985_v18  ;;  %4088 = vmatpush3.bf16.msra.mxu1 %v4441_v48 }
 0x251   :  { %4090 = vmatprep.subr.bf16.mxu1 %v4469_v56 }
 0x253   :  { %3651 = vmatmul.mubr.f32.gmra.mrb[14].mxu1 %v4979_v46 }
 0x254   :  { %4092 = vmatpush3.bf16.msra.mxu1 %v4469_v56  ;;  %3685 = vmatprep.mubr.f32.mxu1 %v4816_v9 }
 0x257   :  { %3686 = vmatmul.mubr.f32.vlgmr.msra.gmra.mrb[0].mxu1 %v4811_v4 }
 0x258   :  { %3688 = vmatprep.mubr.f32.mxu1 %v4833_v31 }
 0x25b   :  { %3689 = vmatmul.mubr.f32.gmra.mrb[2].mxu1 %v4827_v19 }
 0x25c   :  { %3691 = vmatprep.mubr.f32.mxu1 %v4857_v23 }
 0x25f   :  { %3692 = vmatmul.mubr.f32.gmra.mrb[4].mxu1 %v4851_v0 }
 0x260   :  { %3694 = vmatprep.mubr.f32.mxu1 %v4881_v50 }
 0x263   :  { %3695 = vmatmul.mubr.f32.gmra.mrb[6].mxu1 %v4875_v22 }
 0x264   :  { %3697 = vmatprep.mubr.f32.mxu1 %v4907_v29 }
 0x267   :  { %3698 = vmatmul.mubr.f32.gmra.mrb[8].mxu1 %v4901_v49 }
 0x268   :  { %3700 = vmatprep.mubr.f32.mxu1 %v4933_v15 }
 0x26b   :  { %3701 = vmatmul.mubr.f32.gmra.mrb[10].mxu1 %v4927_v7 }
 0x26c   :  { %3703 = vmatprep.mubr.f32.mxu1 %v4959_v60 }
 0x26f   :  { %3704 = vmatmul.mubr.f32.gmra.mrb[12].mxu1 %v4953_v25 }
 0x270   :  { %3706 = vmatprep.mubr.f32.mxu1 %v4985_v18 }
 0x273   :  { %3707 = vmatmul.mubr.f32.gmra.mrb[14].mxu1 %v4979_v46 }
 0x32a   :  { %v3687_v10 = vpop.f32.mrb[0].mxu1 }
 0x32b   :  { %2629 = vst [vmem:[%s5228_s2 + $0x8] sm:$0xff] %v3687_v10  ;;  %v2518_v13 = vpop.f32.mrb[1].mxu1 }
 0x32c   :  { %2628 = vst [vmem:[%s5228_s2] sm:$0xff] %v2518_v13 }
 0x32e   :  { %v3690_v17 = vpop.f32.mrb[2].mxu1 }
 0x32f   :  { %2631 = vst [vmem:[%s5228_s2 + $0x18] sm:$0xff] %v3690_v17  ;;  %v2530_v24 = vpop.f32.mrb[3].mxu1 }
 0x330   :  { %2630 = vst [vmem:[%s5228_s2 + $0x10] sm:$0xff] %v2530_v24 }
 0x332   :  { %v3693_v30 = vpop.f32.mrb[4].mxu1 }
 0x333   :  { %2633 = vst [vmem:[%s5228_s2 + $0x28] sm:$0xff] %v3693_v30  ;;  %v2542_v38 = vpop.f32.mrb[5].mxu1 }
 0x334   :  { %2632 = vst [vmem:[%s5228_s2 + $0x20] sm:$0xff] %v2542_v38 }
 0x336   :  { %v3696_v48 = vpop.f32.mrb[6].mxu1 }
 0x337   :  { %2635 = vst [vmem:[%s5228_s2 + $0x38] sm:$0xff] %v3696_v48  ;;  %v2554_v56 = vpop.f32.mrb[7].mxu1 }
 0x338   :  { %2634 = vst [vmem:[%s5228_s2 + $0x30] sm:$0xff] %v2554_v56 }
 0x33a   :  { %v3699_v42 = vpop.f32.mrb[8].mxu1 }
 0x33b   :  { %2637 = vst [vmem:[%s5228_s2 + $0x48] sm:$0xff] %v3699_v42  ;;  %v2566_v55 = vpop.f32.mrb[9].mxu1 }
 0x33c   :  { %2636 = vst [vmem:[%s5228_s2 + $0x40] sm:$0xff] %v2566_v55 }
 0x33e   :  { %v3702_v4 = vpop.f32.mrb[10].mxu1 }
 0x33f   :  { %2639 = vst [vmem:[%s5228_s2 + $0x58] sm:$0xff] %v3702_v4  ;;  %v2578_v9 = vpop.f32.mrb[11].mxu1 }
 0x340   :  { %2638 = vst [vmem:[%s5228_s2 + $0x50] sm:$0xff] %v2578_v9 }
 0x342   :  { %v3705_v19 = vpop.f32.mrb[12].mxu1 }
 0x343   :  { %2641 = vst [vmem:[%s5228_s2 + $0x68] sm:$0xff] %v3705_v19  ;;  %v2590_v31 = vpop.f32.mrb[13].mxu1 }
 0x344   :  { %2640 = vst [vmem:[%s5228_s2 + $0x60] sm:$0xff] %v2590_v31 }
 0x346   :  { %v3708_v0 = vpop.f32.mrb[14].mxu1 }
 0x347   :  { %2643 = vst [vmem:[%s5228_s2 + $0x78] sm:$0xff] %v3708_v0  ;;  %v2602_v23 = vpop.f32.mrb[15].mxu1 }
 0x348   :  { %2642 = vst [vmem:[%s5228_s2 + $0x70] sm:$0xff] %v2602_v23 }
 0x349   :  { %2652 = vsyncpa [#allocation3], 1 }

</bundles_post_ra>
